<compile_context>
chip_gen: v5e
topology: v5e:2x2
jax: 0.10.0
libtpu: 0.0.40
codegen_flags: <defaults>
</compile_context>

<pallas_src>
import functools

import jax
import jax.numpy as jnp
from jax.experimental import pallas as pl
from jax.experimental.pallas import tpu as pltpu


def _read_layer_kernel(
    smile_ref, lstm_ref, graph_ref,
    wl1_ref, bl1_ref, wl2_ref, bl2_ref,
    wa1_ref, ba1_ref, wa2_ref,
    ws1a_ref, ws1b_ref, bs1_ref,
    ws2_ref, bs2_ref, ws3_ref, bs3_ref,
    o_ref,
):
    f32 = jnp.float32

    smile = smile_ref[...]                                    # (BM, 128)
    graph = graph_ref[...]                                    # (BM, 128)

    # lstm branch: ReLU -> (dropout: identity) -> Linear -> ReLU -> Linear
    lstm = jnp.maximum(lstm_ref[...], 0.0)
    lstm = jnp.dot(lstm, wl1_ref[...], preferred_element_type=f32) + bl1_ref[...]
    lstm = jnp.maximum(lstm, 0.0)
    lstm = jnp.dot(lstm, wl2_ref[...], preferred_element_type=f32) + bl2_ref[...]

    # Attention over the two "tokens" (lstm, graph); softmax over the token axis.
    h0 = jnp.tanh(jnp.dot(lstm, wa1_ref[...], preferred_element_type=f32) + ba1_ref[...])
    h1 = jnp.tanh(jnp.dot(graph, wa1_ref[...], preferred_element_type=f32) + ba1_ref[...])
    l0 = jnp.dot(h0, wa2_ref[...], preferred_element_type=f32)   # (BM, 1)
    l1 = jnp.dot(h1, wa2_ref[...], preferred_element_type=f32)   # (BM, 1)
    m = jnp.maximum(l0, l1)
    e0 = jnp.exp(l0 - m)
    e1 = jnp.exp(l1 - m)
    inv = 1.0 / (e0 + e1)                                        # exact (keeps 1e-4 tol)
    att = (e0 * inv) * lstm + (e1 * inv) * graph                 # (BM, 128)

    p = att + lstm + graph                                       # (BM, 128)

    # features = concat([smile, p], 1) @ Ws1  ==  smile @ Ws1[:D] + p @ Ws1[D:]
    f = (jnp.dot(smile, ws1a_ref[...], preferred_element_type=f32)
         + jnp.dot(p, ws1b_ref[...], preferred_element_type=f32)
         + bs1_ref[...])                                         # (BM, 1280)
    f = jnp.maximum(f, 0.0)
    f = jnp.dot(f, ws2_ref[...], preferred_element_type=f32) + bs2_ref[...]
    f = jnp.maximum(f, 0.0)                                      # (BM, 128)
    out = jnp.dot(f, ws3_ref[...], preferred_element_type=f32) + bs3_ref[...]
    o_ref[...] = out.astype(o_ref.dtype)                         # (BM, 1)


def _round_up(x, m):
    return (x + m - 1) // m * m


def read_layer_forward(smile, lstm, graph, params, block_b=128):
    """smile/lstm/graph: (B, 128) f32; params: 13 weight/bias arrays -> (B, 1)."""
    B, Ds = smile.shape
    Dl = lstm.shape[1]
    Dg = graph.shape[1]

    # Batch-block: BM rows per grid step (multiple of 8 for the sublane tiling).
    BM = min(block_b, _round_up(B, 8))
    Bp = _round_up(B, BM)
    if Bp != B:
        pad = Bp - B
        smile = jnp.pad(smile, ((0, pad), (0, 0)))
        lstm = jnp.pad(lstm, ((0, pad), (0, 0)))
        graph = jnp.pad(graph, ((0, pad), (0, 0)))

    (wl1, bl1, wl2, bl2, wa1, ba1, wa2, ws1, bs1, ws2, bs2, ws3, bs3) = params
    # Split Ws1 so the in-kernel concat becomes two MXU dots.
    ws1a, ws1b = ws1[:Ds, :], ws1[Ds:, :]

    weights = (wl1, bl1, wl2, bl2, wa1, ba1, wa2,
               ws1a, ws1b, bs1, ws2, bs2, ws3, bs3)

    data_specs = [
        pl.BlockSpec((BM, Ds), lambda i: (i, 0)),   # smile
        pl.BlockSpec((BM, Dl), lambda i: (i, 0)),   # lstm
        pl.BlockSpec((BM, Dg), lambda i: (i, 0)),   # graph
    ]
    weight_specs = [pl.BlockSpec(w.shape, lambda i: (0, 0)) for w in weights]

    out = pl.pallas_call(
        _read_layer_kernel,
        out_shape=jax.ShapeDtypeStruct((Bp, 1), jnp.float32),
        grid_spec=pltpu.PrefetchScalarGridSpec(
            num_scalar_prefetch=0,
            grid=(Bp // BM,),
            in_specs=data_specs + weight_specs,
            out_specs=pl.BlockSpec((BM, 1), lambda i: (i, 0)),
        ),
        compiler_params=pltpu.CompilerParams(
            dimension_semantics=("parallel",),
        ),
    )(smile, lstm, graph, *weights)
    return out[:B]


def reference_forward(smile, lstm, graph, params):
    """Pure-JAX reference replicating the PyTorch Read_Layer forward (eval mode)."""
    (wl1, bl1, wl2, bl2, wa1, ba1, wa2, ws1, bs1, ws2, bs2, ws3, bs3) = params
    dot = functools.partial(jnp.dot, precision=jax.lax.Precision.HIGHEST)

    lstm = jax.nn.relu(lstm)
    lstm = dot(lstm, wl1) + bl1
    lstm = jax.nn.relu(lstm)
    lstm = dot(lstm, wl2) + bl2

    z = jnp.stack([lstm, graph], axis=1)                  # (B, 2, 128)
    w = dot(jnp.tanh(dot(z, wa1) + ba1), wa2)             # (B, 2, 1)
    beta = jax.nn.softmax(w, axis=1)
    att = jnp.sum(beta * z, axis=1)                       # (B, 128)

    p = att + lstm + graph
    feats = jnp.concatenate([smile, p], axis=1)           # (B, 256)
    f = jax.nn.relu(dot(feats, ws1) + bs1)
    f = jax.nn.relu(dot(f, ws2) + bs2)
    return dot(f, ws3) + bs3                              # (B, 1)


if __name__ == "__main__":
    # Shapes implied by the module: smile_dim = 128 (so cat -> 256 feeds lin_s1),
    # lstm/graph feature dim = 128, attention hidden = 16. Small batch B = 2.
    B, smile_dim, att_hidden = 2, 128, 16

    key = jax.random.PRNGKey(0)
    keys = jax.random.split(key, 16)

    def linear_params(kw, kb, fan_in, fan_out, bias=True):
        bound = 1.0 / (fan_in ** 0.5)
        w = jax.random.uniform(kw, (fan_in, fan_out), jnp.float32, -bound, bound)
        if not bias:
            return w
        b = jax.random.uniform(kb, (1, fan_out), jnp.float32, -bound, bound)
        return w, b

    smile = jax.random.normal(keys[0], (B, smile_dim), jnp.float32)
    lstm = jax.random.normal(keys[1], (B, 128), jnp.float32)
    graph = jax.random.normal(keys[2], (B, 128), jnp.float32)

    wl1, bl1 = linear_params(keys[3], keys[4], 128, 128)                    # lstm_lin1
    wl2, bl2 = linear_params(keys[5], keys[6], 128, 128)                    # lstm_lin2
    wa1, ba1 = linear_params(keys[7], keys[8], 128, att_hidden)             # att proj 1
    wa2 = linear_params(keys[9], keys[9], att_hidden, 1, bias=False)        # att proj 2
    ws1, bs1 = linear_params(keys[10], keys[11], 2 * smile_dim, 10 * smile_dim)  # lin_s1
    ws2, bs2 = linear_params(keys[12], keys[13], 10 * smile_dim, smile_dim)      # lin_s2
    ws3, bs3 = linear_params(keys[14], keys[15], smile_dim, 1)                   # lin_s3

    params = (wl1, bl1, wl2, bl2, wa1, ba1, wa2, ws1, bs1, ws2, bs2, ws3, bs3)

    out = read_layer_forward(smile, lstm, graph, params)
    out = jax.block_until_ready(out)

    ref = reference_forward(smile, lstm, graph, params)
    assert out.shape == (B, 1)
    assert jnp.allclose(out, ref, atol=1e-4, rtol=1e-4), "mismatch vs reference"

    print("KERNEL_OK")
</pallas_src>

<mosaic_0001>
module attributes {stable_mosaic.version = 11 : i64} {
  func.func @_read_layer_kernel(%arg0: i32, %arg1: memref<8x128xf32, #tpu.memory_space<vmem>>, %arg2: memref<8x128xf32, #tpu.memory_space<vmem>>, %arg3: memref<8x128xf32, #tpu.memory_space<vmem>>, %arg4: memref<128x128xf32, #tpu.memory_space<vmem>>, %arg5: memref<1x128xf32, #tpu.memory_space<vmem>>, %arg6: memref<128x128xf32, #tpu.memory_space<vmem>>, %arg7: memref<1x128xf32, #tpu.memory_space<vmem>>, %arg8: memref<128x16xf32, #tpu.memory_space<vmem>>, %arg9: memref<1x16xf32, #tpu.memory_space<vmem>>, %arg10: memref<16x1xf32, #tpu.memory_space<vmem>>, %arg11: memref<128x1280xf32, #tpu.memory_space<vmem>>, %arg12: memref<128x1280xf32, #tpu.memory_space<vmem>>, %arg13: memref<1x1280xf32, #tpu.memory_space<vmem>>, %arg14: memref<1280x128xf32, #tpu.memory_space<vmem>>, %arg15: memref<1x128xf32, #tpu.memory_space<vmem>>, %arg16: memref<128x1xf32, #tpu.memory_space<vmem>>, %arg17: memref<1x1xf32, #tpu.memory_space<vmem>>, %arg18: memref<8x1xf32, #tpu.memory_space<vmem>>) attributes {dimension_semantics = [#tpu.dimension_semantics<parallel>], iteration_bounds = array<i64: 1>, scalar_prefetch = 0 : i64, scratch_operands = 0 : i64, tpu.core_type = #tpu.core_type<tc>, window_params = [{transform_indices = @transform_0, window_bounds = array<i64: 8, 128>}, {transform_indices = @transform_1, window_bounds = array<i64: 8, 128>}, {transform_indices = @transform_2, window_bounds = array<i64: 8, 128>}, {pipeline_mode = #tpu.pipeline_mode<synchronous>, transform_indices = @transform_3, window_bounds = array<i64: 128, 128>}, {pipeline_mode = #tpu.pipeline_mode<synchronous>, transform_indices = @transform_4, window_bounds = array<i64: 1, 128>}, {pipeline_mode = #tpu.pipeline_mode<synchronous>, transform_indices = @transform_5, window_bounds = array<i64: 128, 128>}, {pipeline_mode = #tpu.pipeline_mode<synchronous>, transform_indices = @transform_6, window_bounds = array<i64: 1, 128>}, {pipeline_mode = #tpu.pipeline_mode<synchronous>, transform_indices = @transform_7, window_bounds = array<i64: 128, 16>}, {pipeline_mode = #tpu.pipeline_mode<synchronous>, transform_indices = @transform_8, window_bounds = array<i64: 1, 16>}, {pipeline_mode = #tpu.pipeline_mode<synchronous>, transform_indices = @transform_9, window_bounds = array<i64: 16, 1>}, {pipeline_mode = #tpu.pipeline_mode<synchronous>, transform_indices = @transform_10, window_bounds = array<i64: 128, 1280>}, {pipeline_mode = #tpu.pipeline_mode<synchronous>, transform_indices = @transform_11, window_bounds = array<i64: 128, 1280>}, {pipeline_mode = #tpu.pipeline_mode<synchronous>, transform_indices = @transform_12, window_bounds = array<i64: 1, 1280>}, {pipeline_mode = #tpu.pipeline_mode<synchronous>, transform_indices = @transform_13, window_bounds = array<i64: 1280, 128>}, {pipeline_mode = #tpu.pipeline_mode<synchronous>, transform_indices = @transform_14, window_bounds = array<i64: 1, 128>}, {pipeline_mode = #tpu.pipeline_mode<synchronous>, transform_indices = @transform_15, window_bounds = array<i64: 128, 1>}, {pipeline_mode = #tpu.pipeline_mode<synchronous>, transform_indices = @transform_16, window_bounds = array<i64: 1, 1>}, {transform_indices = @transform_17, window_bounds = array<i64: 8, 1>}]} {
    %c0 = arith.constant 0 : index
    %c0_0 = arith.constant 0 : index
    %0 = vector.load %arg1[%c0, %c0_0] : memref<8x128xf32, #tpu.memory_space<vmem>>, vector<8x128xf32>
    %c0_1 = arith.constant 0 : index
    %c0_2 = arith.constant 0 : index
    %1 = vector.load %arg3[%c0_1, %c0_2] : memref<8x128xf32, #tpu.memory_space<vmem>>, vector<8x128xf32>
    %c0_3 = arith.constant 0 : index
    %c0_4 = arith.constant 0 : index
    %2 = vector.load %arg2[%c0_3, %c0_4] : memref<8x128xf32, #tpu.memory_space<vmem>>, vector<8x128xf32>
    %cst = arith.constant 0.000000e+00 : f32
    %3 = vector.broadcast %cst : f32 to vector<8x128xf32>
    %4 = arith.maximumf %2, %3 : vector<8x128xf32>
    %c0_5 = arith.constant 0 : index
    %c0_6 = arith.constant 0 : index
    %5 = vector.load %arg4[%c0_5, %c0_6] : memref<128x128xf32, #tpu.memory_space<vmem>>, vector<128x128xf32>
    %cst_7 = arith.constant dense<0.000000e+00> : vector<8x128xf32>
    %6 = tpu.matmul %4, %5, %cst_7 {dimension_numbers = #tpu.dot_dimension_numbers<[1], [0], [0], [1], [0, 0, 1, 1], [], []>} : vector<8x128xf32>, vector<128x128xf32>, vector<8x128xf32> -> vector<8x128xf32>
    %c0_8 = arith.constant 0 : index
    %c0_9 = arith.constant 0 : index
    %7 = vector.load %arg5[%c0_8, %c0_9] : memref<1x128xf32, #tpu.memory_space<vmem>>, vector<1x128xf32>
    %8 = vector.broadcast %7 : vector<1x128xf32> to vector<8x128xf32>
    %9 = arith.addf %6, %8 : vector<8x128xf32>
    %cst_10 = arith.constant 0.000000e+00 : f32
    %10 = vector.broadcast %cst_10 : f32 to vector<8x128xf32>
    %11 = arith.maximumf %9, %10 : vector<8x128xf32>
    %c0_11 = arith.constant 0 : index
    %c0_12 = arith.constant 0 : index
    %12 = vector.load %arg6[%c0_11, %c0_12] : memref<128x128xf32, #tpu.memory_space<vmem>>, vector<128x128xf32>
    %cst_13 = arith.constant dense<0.000000e+00> : vector<8x128xf32>
    %13 = tpu.matmul %11, %12, %cst_13 {dimension_numbers = #tpu.dot_dimension_numbers<[1], [0], [0], [1], [0, 0, 1, 1], [], []>} : vector<8x128xf32>, vector<128x128xf32>, vector<8x128xf32> -> vector<8x128xf32>
    %c0_14 = arith.constant 0 : index
    %c0_15 = arith.constant 0 : index
    %14 = vector.load %arg7[%c0_14, %c0_15] : memref<1x128xf32, #tpu.memory_space<vmem>>, vector<1x128xf32>
    %15 = vector.broadcast %14 : vector<1x128xf32> to vector<8x128xf32>
    %16 = arith.addf %13, %15 : vector<8x128xf32>
    %c0_16 = arith.constant 0 : index
    %c0_17 = arith.constant 0 : index
    %17 = vector.load %arg8[%c0_16, %c0_17] : memref<128x16xf32, #tpu.memory_space<vmem>>, vector<128x16xf32>
    %cst_18 = arith.constant dense<0.000000e+00> : vector<8x16xf32>
    %18 = tpu.matmul %16, %17, %cst_18 {dimension_numbers = #tpu.dot_dimension_numbers<[1], [0], [0], [1], [0, 0, 1, 1], [], []>} : vector<8x128xf32>, vector<128x16xf32>, vector<8x16xf32> -> vector<8x16xf32>
    %c0_19 = arith.constant 0 : index
    %c0_20 = arith.constant 0 : index
    %19 = vector.load %arg9[%c0_19, %c0_20] : memref<1x16xf32, #tpu.memory_space<vmem>>, vector<1x16xf32>
    %20 = vector.broadcast %19 : vector<1x16xf32> to vector<8x16xf32>
    %21 = arith.addf %18, %20 : vector<8x16xf32>
    %22 = math.tanh %21 : vector<8x16xf32>
    %c0_21 = arith.constant 0 : index
    %c0_22 = arith.constant 0 : index
    %23 = vector.load %arg8[%c0_21, %c0_22] : memref<128x16xf32, #tpu.memory_space<vmem>>, vector<128x16xf32>
    %cst_23 = arith.constant dense<0.000000e+00> : vector<8x16xf32>
    %24 = tpu.matmul %1, %23, %cst_23 {dimension_numbers = #tpu.dot_dimension_numbers<[1], [0], [0], [1], [0, 0, 1, 1], [], []>} : vector<8x128xf32>, vector<128x16xf32>, vector<8x16xf32> -> vector<8x16xf32>
    %c0_24 = arith.constant 0 : index
    %c0_25 = arith.constant 0 : index
    %25 = vector.load %arg9[%c0_24, %c0_25] : memref<1x16xf32, #tpu.memory_space<vmem>>, vector<1x16xf32>
    %26 = vector.broadcast %25 : vector<1x16xf32> to vector<8x16xf32>
    %27 = arith.addf %24, %26 : vector<8x16xf32>
    %28 = math.tanh %27 : vector<8x16xf32>
    %c0_26 = arith.constant 0 : index
    %c0_27 = arith.constant 0 : index
    %29 = vector.load %arg10[%c0_26, %c0_27] : memref<16x1xf32, #tpu.memory_space<vmem>>, vector<16x1xf32>
    %cst_28 = arith.constant dense<0.000000e+00> : vector<8x1xf32>
    %30 = tpu.matmul %22, %29, %cst_28 {dimension_numbers = #tpu.dot_dimension_numbers<[1], [0], [0], [1], [0, 0, 1, 1], [], []>} : vector<8x16xf32>, vector<16x1xf32>, vector<8x1xf32> -> vector<8x1xf32>
    %c0_29 = arith.constant 0 : index
    %c0_30 = arith.constant 0 : index
    %31 = vector.load %arg10[%c0_29, %c0_30] : memref<16x1xf32, #tpu.memory_space<vmem>>, vector<16x1xf32>
    %cst_31 = arith.constant dense<0.000000e+00> : vector<8x1xf32>
    %32 = tpu.matmul %28, %31, %cst_31 {dimension_numbers = #tpu.dot_dimension_numbers<[1], [0], [0], [1], [0, 0, 1, 1], [], []>} : vector<8x16xf32>, vector<16x1xf32>, vector<8x1xf32> -> vector<8x1xf32>
    %33 = arith.maximumf %30, %32 : vector<8x1xf32>
    %34 = arith.subf %30, %33 : vector<8x1xf32>
    %35 = math.exp %34 : vector<8x1xf32>
    %36 = arith.subf %32, %33 : vector<8x1xf32>
    %37 = math.exp %36 : vector<8x1xf32>
    %38 = arith.addf %35, %37 : vector<8x1xf32>
    %cst_32 = arith.constant 1.000000e+00 : f32
    %39 = vector.broadcast %cst_32 : f32 to vector<8x1xf32>
    %40 = arith.divf %39, %38 : vector<8x1xf32>
    %41 = arith.mulf %35, %40 : vector<8x1xf32>
    %42 = vector.broadcast %41 : vector<8x1xf32> to vector<8x128xf32>
    %43 = arith.mulf %42, %16 : vector<8x128xf32>
    %44 = arith.mulf %37, %40 : vector<8x1xf32>
    %45 = vector.broadcast %44 : vector<8x1xf32> to vector<8x128xf32>
    %46 = arith.mulf %45, %1 : vector<8x128xf32>
    %47 = arith.addf %43, %46 : vector<8x128xf32>
    %48 = arith.addf %47, %16 : vector<8x128xf32>
    %49 = arith.addf %48, %1 : vector<8x128xf32>
    %c0_33 = arith.constant 0 : index
    %c0_34 = arith.constant 0 : index
    %50 = vector.load %arg11[%c0_33, %c0_34] : memref<128x1280xf32, #tpu.memory_space<vmem>>, vector<128x1280xf32>
    %cst_35 = arith.constant dense<0.000000e+00> : vector<8x1280xf32>
    %51 = tpu.matmul %0, %50, %cst_35 {dimension_numbers = #tpu.dot_dimension_numbers<[1], [0], [0], [1], [0, 0, 1, 1], [], []>} : vector<8x128xf32>, vector<128x1280xf32>, vector<8x1280xf32> -> vector<8x1280xf32>
    %c0_36 = arith.constant 0 : index
    %c0_37 = arith.constant 0 : index
    %52 = vector.load %arg12[%c0_36, %c0_37] : memref<128x1280xf32, #tpu.memory_space<vmem>>, vector<128x1280xf32>
    %cst_38 = arith.constant dense<0.000000e+00> : vector<8x1280xf32>
    %53 = tpu.matmul %49, %52, %cst_38 {dimension_numbers = #tpu.dot_dimension_numbers<[1], [0], [0], [1], [0, 0, 1, 1], [], []>} : vector<8x128xf32>, vector<128x1280xf32>, vector<8x1280xf32> -> vector<8x1280xf32>
    %54 = arith.addf %51, %53 : vector<8x1280xf32>
    %c0_39 = arith.constant 0 : index
    %c0_40 = arith.constant 0 : index
    %55 = vector.load %arg13[%c0_39, %c0_40] : memref<1x1280xf32, #tpu.memory_space<vmem>>, vector<1x1280xf32>
    %56 = vector.broadcast %55 : vector<1x1280xf32> to vector<8x1280xf32>
    %57 = arith.addf %54, %56 : vector<8x1280xf32>
    %cst_41 = arith.constant 0.000000e+00 : f32
    %58 = vector.broadcast %cst_41 : f32 to vector<8x1280xf32>
    %59 = arith.maximumf %57, %58 : vector<8x1280xf32>
    %c0_42 = arith.constant 0 : index
    %c0_43 = arith.constant 0 : index
    %60 = vector.load %arg14[%c0_42, %c0_43] : memref<1280x128xf32, #tpu.memory_space<vmem>>, vector<1280x128xf32>
    %cst_44 = arith.constant dense<0.000000e+00> : vector<8x128xf32>
    %61 = tpu.matmul %59, %60, %cst_44 {dimension_numbers = #tpu.dot_dimension_numbers<[1], [0], [0], [1], [0, 0, 1, 1], [], []>} : vector<8x1280xf32>, vector<1280x128xf32>, vector<8x128xf32> -> vector<8x128xf32>
    %c0_45 = arith.constant 0 : index
    %c0_46 = arith.constant 0 : index
    %62 = vector.load %arg15[%c0_45, %c0_46] : memref<1x128xf32, #tpu.memory_space<vmem>>, vector<1x128xf32>
    %63 = vector.broadcast %62 : vector<1x128xf32> to vector<8x128xf32>
    %64 = arith.addf %61, %63 : vector<8x128xf32>
    %cst_47 = arith.constant 0.000000e+00 : f32
    %65 = vector.broadcast %cst_47 : f32 to vector<8x128xf32>
    %66 = arith.maximumf %64, %65 : vector<8x128xf32>
    %c0_48 = arith.constant 0 : index
    %c0_49 = arith.constant 0 : index
    %67 = vector.load %arg16[%c0_48, %c0_49] : memref<128x1xf32, #tpu.memory_space<vmem>>, vector<128x1xf32>
    %cst_50 = arith.constant dense<0.000000e+00> : vector<8x1xf32>
    %68 = tpu.matmul %66, %67, %cst_50 {dimension_numbers = #tpu.dot_dimension_numbers<[1], [0], [0], [1], [0, 0, 1, 1], [], []>} : vector<8x128xf32>, vector<128x1xf32>, vector<8x1xf32> -> vector<8x1xf32>
    %c0_51 = arith.constant 0 : index
    %c0_52 = arith.constant 0 : index
    %69 = vector.load %arg17[%c0_51, %c0_52] : memref<1x1xf32, #tpu.memory_space<vmem>>, vector<1x1xf32>
    %70 = vector.broadcast %69 : vector<1x1xf32> to vector<8x1xf32>
    %71 = arith.addf %68, %70 : vector<8x1xf32>
    %c0_53 = arith.constant 0 : index
    %c0_54 = arith.constant 0 : index
    %72 = vector.load %arg18[%c0_53, %c0_54] : memref<8x1xf32, #tpu.memory_space<vmem>>, vector<8x1xf32>
    tpu.vector_store %arg18[%c0_53, %c0_54], %71 {strides = array<i32>} : memref<8x1xf32, #tpu.memory_space<vmem>>, vector<8x1xf32>,
    return
  }
  func.func @transform_0(%arg0: i32) -> (i32, i32) {
    %c0_i32 = arith.constant 0 : i32
    %c0_i32_0 = arith.constant 0 : i32
    return %arg0, %c0_i32 : i32, i32
  }
  func.func @transform_1(%arg0: i32) -> (i32, i32) {
    %c0_i32 = arith.constant 0 : i32
    %c0_i32_0 = arith.constant 0 : i32
    return %arg0, %c0_i32 : i32, i32
  }
  func.func @transform_2(%arg0: i32) -> (i32, i32) {
    %c0_i32 = arith.constant 0 : i32
    %c0_i32_0 = arith.constant 0 : i32
    return %arg0, %c0_i32 : i32, i32
  }
  func.func @transform_3(%arg0: i32) -> (i32, i32) {
    %c0_i32 = arith.constant 0 : i32
    %c0_i32_0 = arith.constant 0 : i32
    %c0_i32_1 = arith.constant 0 : i32
    return %c0_i32, %c0_i32_0 : i32, i32
  }
  func.func @transform_4(%arg0: i32) -> (i32, i32) {
    %c0_i32 = arith.constant 0 : i32
    %c0_i32_0 = arith.constant 0 : i32
    %c0_i32_1 = arith.constant 0 : i32
    return %c0_i32, %c0_i32_0 : i32, i32
  }
  func.func @transform_5(%arg0: i32) -> (i32, i32) {
    %c0_i32 = arith.constant 0 : i32
    %c0_i32_0 = arith.constant 0 : i32
    %c0_i32_1 = arith.constant 0 : i32
    return %c0_i32, %c0_i32_0 : i32, i32
  }
  func.func @transform_6(%arg0: i32) -> (i32, i32) {
    %c0_i32 = arith.constant 0 : i32
    %c0_i32_0 = arith.constant 0 : i32
    %c0_i32_1 = arith.constant 0 : i32
    return %c0_i32, %c0_i32_0 : i32, i32
  }
  func.func @transform_7(%arg0: i32) -> (i32, i32) {
    %c0_i32 = arith.constant 0 : i32
    %c0_i32_0 = arith.constant 0 : i32
    %c0_i32_1 = arith.constant 0 : i32
    return %c0_i32, %c0_i32_0 : i32, i32
  }
  func.func @transform_8(%arg0: i32) -> (i32, i32) {
    %c0_i32 = arith.constant 0 : i32
    %c0_i32_0 = arith.constant 0 : i32
    %c0_i32_1 = arith.constant 0 : i32
    return %c0_i32, %c0_i32_0 : i32, i32
  }
  func.func @transform_9(%arg0: i32) -> (i32, i32) {
    %c0_i32 = arith.constant 0 : i32
    %c0_i32_0 = arith.constant 0 : i32
    %c0_i32_1 = arith.constant 0 : i32
    return %c0_i32, %c0_i32_0 : i32, i32
  }
  func.func @transform_10(%arg0: i32) -> (i32, i32) {
    %c0_i32 = arith.constant 0 : i32
    %c0_i32_0 = arith.constant 0 : i32
    %c0_i32_1 = arith.constant 0 : i32
    return %c0_i32, %c0_i32_0 : i32, i32
  }
  func.func @transform_11(%arg0: i32) -> (i32, i32) {
    %c0_i32 = arith.constant 0 : i32
    %c0_i32_0 = arith.constant 0 : i32
    %c0_i32_1 = arith.constant 0 : i32
    return %c0_i32, %c0_i32_0 : i32, i32
  }
  func.func @transform_12(%arg0: i32) -> (i32, i32) {
    %c0_i32 = arith.constant 0 : i32
    %c0_i32_0 = arith.constant 0 : i32
    %c0_i32_1 = arith.constant 0 : i32
    return %c0_i32, %c0_i32_0 : i32, i32
  }
  func.func @transform_13(%arg0: i32) -> (i32, i32) {
    %c0_i32 = arith.constant 0 : i32
    %c0_i32_0 = arith.constant 0 : i32
    %c0_i32_1 = arith.constant 0 : i32
    return %c0_i32, %c0_i32_0 : i32, i32
  }
  func.func @transform_14(%arg0: i32) -> (i32, i32) {
    %c0_i32 = arith.constant 0 : i32
    %c0_i32_0 = arith.constant 0 : i32
    %c0_i32_1 = arith.constant 0 : i32
    return %c0_i32, %c0_i32_0 : i32, i32
  }
  func.func @transform_15(%arg0: i32) -> (i32, i32) {
    %c0_i32 = arith.constant 0 : i32
    %c0_i32_0 = arith.constant 0 : i32
    %c0_i32_1 = arith.constant 0 : i32
    return %c0_i32, %c0_i32_0 : i32, i32
  }
  func.func @transform_16(%arg0: i32) -> (i32, i32) {
    %c0_i32 = arith.constant 0 : i32
    %c0_i32_0 = arith.constant 0 : i32
    %c0_i32_1 = arith.constant 0 : i32
    return %c0_i32, %c0_i32_0 : i32, i32
  }
  func.func @transform_17(%arg0: i32) -> (i32, i32) {
    %c0_i32 = arith.constant 0 : i32
    %c0_i32_0 = arith.constant 0 : i32
    return %arg0, %c0_i32 : i32, i32
  }
}

</mosaic_0001>

<bundles_post_ra>
// kernel: tpu_custom_call.1
= control target key start
LH: loop header
LB: loop body
LE: loop exit
PB: predicated region body
PF: predicated region fallthrough
CT: control target
= control target key end

     0   :  { %s2118_s0 = inlined_call_operand.vmem [shape: f32[8,128], index: 0, kind: input, shape index: {}]   ;;  %s2119_s1 = inlined_call_operand.hbm [shape: f32[8,128], index: 1, kind: input, shape index: {}]   ;;  %s2120_s2 = inlined_call_operand.hbm [shape: f32[8,128], index: 2, kind: input, shape index: {}]   ;;  %s2121_s3 = inlined_call_operand.vmem [shape: f32[128,128], index: 3, kind: input, shape index: {}]   ;;  %s2122_s4 = inlined_call_operand.vmem [shape: f32[1,128], index: 4, kind: input, shape index: {}]   ;;  %s2123_s5 = inlined_call_operand.vmem [shape: f32[128,128], index: 5, kind: input, shape index: {}]   ;;  %s2124_s6 = inlined_call_operand.vmem [shape: f32[1,128], index: 6, kind: input, shape index: {}]   ;;  %s2125_s7 = inlined_call_operand.vmem [shape: f32[128,16], index: 7, kind: input, shape index: {}]   ;;  %s2126_s8 = inlined_call_operand.vmem [shape: f32[1,16], index: 8, kind: input, shape index: {}]   ;;  %s2127_s9 = inlined_call_operand.vmem [shape: f32[16,1], index: 9, kind: input, shape index: {}]   ;;  %s2128_s10 = inlined_call_operand.hbm [shape: f32[128,1280], index: 10, kind: input, shape index: {}]   ;;  %s2129_s11 = inlined_call_operand.hbm [shape: f32[128,1280], index: 11, kind: input, shape index: {}]   ;;  %s2130_s12 = inlined_call_operand.vmem [shape: f32[1,1280], index: 12, kind: input, shape index: {}]   ;;  %s2131_s13 = inlined_call_operand.hbm [shape: f32[1280,128], index: 13, kind: input, shape index: {}]   ;;  %s2132_s14 = inlined_call_operand.vmem [shape: f32[1,128], index: 14, kind: input, shape index: {}]   ;;  %s2133_s15 = inlined_call_operand.vmem [shape: f32[128,1], index: 15, kind: input, shape index: {}]   ;;  %s2134_s16 = inlined_call_operand.<no memory space> [shape: f32[1,1], index: 16, kind: input, shape index: {}]   ;;  %s2135_s17 = inlined_call_operand.vmem [shape: f32[8,1], index: 17, kind: output, shape index: {}]  }
   0x1   :  { %2136 = sst [smem:[#allocation14_spill]] %s2118_s0  ;;  %v22_v0 = vstv %s2134_s16 }
   0x2   :  { %2137 = sst [smem:[#allocation15_spill]] %s2119_s1  ;;  %23 = vst [vmem:[#allocation2] sm:$0x1] %v22_v0 }
   0x3   :  { %24 = vsyncpa [#allocation4], 0 }
   0x4   :  { %25 = vsyncpa [#allocation6], 0  ;;  %s45_s28 = sshll.u32 %s2120_s2, 4  ;;  %s46_s28 = int_to_ptr.hbm [resolvable:$true] %s45_s28 }
   0x5   :  { %26 = vsyncpa [#allocation9], 0  ;;  %s1700_s29 = smov [#allocation5]   ;;  %s82_s19 = sshll.u32 %s2129_s11, 4  ;;  %s83_s19 = int_to_ptr.hbm [resolvable:$true] %s82_s19 }
   0x6   :  { %s47_s0 = sshll.u32 %s1700_s29, 4  ;;  %s1701_s1 = smov [#allocation8]   ;;  %s48_s0 = int_to_ptr.vmem [resolvable:$true] %s47_s0 }
   0x7   :  { %50 = dma.hbm_to_vmem [thread:$0]  %s46_s28, 128, %s48_s0, [#allocation6]  }
   0x8   :  { %s84_s16 = sshll.u32 %s1701_s1, 4  ;;  %s2138_s22 = sld [smem:[#allocation15_spill]]  ;;  %s85_s16 = int_to_ptr.vmem [resolvable:$true] %s84_s16 }
   0x9   :  { %s1702_s2 = smov 1280   ;;  %s1703_s24 = smov 80  }
   0xa   :  { %90 = dma.hbm_to_vmem [thread:$0]  %s83_s19, 20480, %s85_s16, [#allocation9], %s1702_s2, %s1702_s2, %s1703_s24  }
   0xb   :  { %s69_s27 = sshll.u32 %s2128_s10, 4  ;;  %s1704_s28 = smov [#allocation3]   ;;  %s70_s27 = int_to_ptr.hbm [resolvable:$true] %s69_s27 }
   0xc   :  { %s36_s29 = sshll.u32 %s1704_s28, 4  ;;  %s1705_s11 = smov [#allocation7]   ;;  %s37_s29 = int_to_ptr.vmem [resolvable:$true] %s36_s29 }
   0xd   :  { %s71_s0 = sshll.u32 %s1705_s11, 4  ;;  %s97_s1 = sshll.u32 %s2131_s13, 4  ;;  %s72_s0 = int_to_ptr.vmem [resolvable:$true] %s71_s0  ;;  %s98_s1 = int_to_ptr.hbm [resolvable:$true] %s97_s1 }
   0xe   :  { %s34_s23 = sshll.u32 %s2138_s22, 4  ;;  %s1706_s20 = smov [#allocation10]   ;;  %s35_s23 = int_to_ptr.hbm [resolvable:$true] %s34_s23 }
   0xf   :  { %39 = dma.hbm_to_vmem [thread:$0]  %s35_s23, 128, %s37_s29, [#allocation4]  }
  0x10   :  { %77 = dma.hbm_to_vmem [thread:$0]  %s70_s27, 20480, %s72_s0, [#allocation6], %s1702_s2, %s1702_s2, %s1703_s24  }
  0x11   :  { %s99_s19 = sshll.u32 %s1706_s20, 4  ;;  %s1707_s16 = smov 128   ;;  %s100_s19 = int_to_ptr.vmem [resolvable:$true] %s99_s19 }
  0x12   :  { %s1708_s21 = smov 8  }
  0x13   :  { %105 = dma.hbm_to_vmem [thread:$0]  %s98_s1, 20480, %s100_s19, [#allocation9], %s1707_s16, %s1707_s16, %s1708_s21  }
  0x14   :  { %1694 = dma.done.wait [#allocation4], 128  }
  0x15   :  { %1695 = vsyncadd [#allocation4], 4294967168 }
  0x16   :  { %1696 = dma.done.wait [#allocation6], 20608  }
  0x17   :  { %1697 = vsyncadd [#allocation6], 4294946688 }
  0x18   :  { %1698 = dma.done.wait [#allocation9], 40960  }
  0x19   :  { %1699 = vsyncadd [#allocation9], 4294926336  ;;  %v151_v1 = vld [vmem:[%s2121_s3 + $0x78] sm:$0xff]  ;;  %v150_v2 = vld [vmem:[%s2121_s3 + $0x70] sm:$0xff]  ;;  %vm281_vm0 = vcmask 130048   ;;  %vm1537_vm5 = vcmask 7168  }
  0x1a   :  { %156 = vmatpush.msra.mxu0 %v151_v1  ;;  %v149_v3 = vld [vmem:[%s2121_s3 + $0x68] sm:$0xff]  ;;  %v148_v4 = vld [vmem:[%s2121_s3 + $0x60] sm:$0xff]  ;;  %v192_v5 = vld [vmem:[%s2123_s5 + $0x78] sm:$0xff] }
  0x1b   :  { %v147_v6 = vld [vmem:[%s2121_s3 + $0x58] sm:$0xff]  ;;  %197 = vmatpush.msra.mxu1 %v192_v5  ;;  %v191_v7 = vld [vmem:[%s2123_s5 + $0x70] sm:$0xff]  ;;  %v190_v8 = vld [vmem:[%s2123_s5 + $0x68] sm:$0xff] }
  0x1c   :  { %157 = vmatpush.msra.mxu0 %v150_v2  ;;  %v146_v9 = vld [vmem:[%s2121_s3 + $0x50] sm:$0xff]  ;;  %v145_v10 = vld [vmem:[%s2121_s3 + $0x48] sm:$0xff]  ;;  %v189_v11 = vld [vmem:[%s2123_s5 + $0x60] sm:$0xff] }
  0x1d   :  { %198 = vmatpush.msra.mxu1 %v191_v7  ;;  %v188_v12 = vld [vmem:[%s2123_s5 + $0x58] sm:$0xff]  ;;  %v144_v13 = vld [vmem:[%s2121_s3 + $0x40] sm:$0xff]  ;;  %v187_v14 = vld [vmem:[%s2123_s5 + $0x50] sm:$0xff] }
  0x1e   :  { %158 = vmatpush.msra.mxu0 %v149_v3  ;;  %v143_v15 = vld [vmem:[%s2121_s3 + $0x38] sm:$0xff]  ;;  %v186_v16 = vld [vmem:[%s2123_s5 + $0x48] sm:$0xff]  ;;  %v142_v17 = vld [vmem:[%s2121_s3 + $0x30] sm:$0xff] }
  0x1f   :  { %199 = vmatpush.msra.mxu1 %v190_v8  ;;  %v185_v18 = vld [vmem:[%s2123_s5 + $0x40] sm:$0xff]  ;;  %v141_v19 = vld [vmem:[%s2121_s3 + $0x28] sm:$0xff]  ;;  %v184_v20 = vld [vmem:[%s2123_s5 + $0x38] sm:$0xff] }
  0x20   :  { %159 = vmatpush.msra.mxu0 %v148_v4  ;;  %v140_v21 = vld [vmem:[%s2121_s3 + $0x20] sm:$0xff]  ;;  %v183_v22 = vld [vmem:[%s2123_s5 + $0x30] sm:$0xff]  ;;  %v139_v23 = vld [vmem:[%s2121_s3 + $0x18] sm:$0xff]  ;;  %v1709_v4 = vmov 0  }
  0x21   :  { %200 = vmatpush.msra.mxu1 %v189_v11  ;;  %v182_v24 = vld [vmem:[%s2123_s5 + $0x28] sm:$0xff]  ;;  %v138_v25 = vld [vmem:[%s2121_s3 + $0x10] sm:$0xff]  ;;  %v181_v27 = vld [vmem:[%s2123_s5 + $0x20] sm:$0xff]  ;;  %1558 = vset.pattern.permute.xlu0 %v1709_v4 }
  0x22   :  { %160 = vmatpush.msra.mxu0 %v147_v6  ;;  %v134_v26 = vld [vmem:[#allocation3] sm:$0xff]  ;;  %v180_v29 = vld [vmem:[%s2123_s5 + $0x18] sm:$0xff]  ;;  %v179_v32 = vld [vmem:[%s2123_s5 + $0x10] sm:$0xff] }
  0x23   :  { %201 = vmatpush.msra.mxu1 %v188_v12  ;;  %v137_v28 = vld [vmem:[%s2121_s3 + $0x8] sm:$0xff]  ;;  %v136_v30 = vld [vmem:[%s2121_s3] sm:$0xff]  ;;  %v135_v31 = vmax.f32 %v134_v26, 0.0  ;;  %v232_v35 = vld [vmem:[%s2125_s7 + $0x78] sm:$0xff] }
  0x24   :  { %161 = vmatpush.msra.mxu0 %v146_v9  ;;  %v178_v33 = vld [vmem:[%s2123_s5 + $0x8] sm:$0xff]  ;;  %v177_v34 = vld [vmem:[%s2123_s5] sm:$0xff]  ;;  %v231_v36 = vld [vmem:[%s2125_s7 + $0x70] sm:$0xff]  ;;  %237 = vmatpush.msra.mxu2 %v232_v35 }
  0x25   :  { %202 = vmatpush.msra.mxu1 %v187_v14  ;;  %258 = vmatpush.msra.mxu3 %v232_v35  ;;  %v230_v37 = vld [vmem:[%s2125_s7 + $0x68] sm:$0xff]  ;;  %v229_v38 = vld [vmem:[%s2125_s7 + $0x60] sm:$0xff]  ;;  %v228_v39 = vld [vmem:[%s2125_s7 + $0x58] sm:$0xff] }
  0x26   :  { %162 = vmatpush.msra.mxu0 %v145_v10  ;;  %238 = vmatpush.msra.mxu2 %v231_v36  ;;  %v227_v40 = vld [vmem:[%s2125_s7 + $0x50] sm:$0xff]  ;;  %v226_v41 = vld [vmem:[%s2125_s7 + $0x48] sm:$0xff]  ;;  %v225_v42 = vld [vmem:[%s2125_s7 + $0x40] sm:$0xff] }
  0x27   :  { %203 = vmatpush.msra.mxu1 %v186_v16  ;;  %259 = vmatpush.msra.mxu3 %v231_v36  ;;  %v224_v43 = vld [vmem:[%s2125_s7 + $0x38] sm:$0xff]  ;;  %v223_v44 = vld [vmem:[%s2125_s7 + $0x30] sm:$0xff]  ;;  %v222_v45 = vld [vmem:[%s2125_s7 + $0x28] sm:$0xff] }
  0x28   :  { %163 = vmatpush.msra.mxu0 %v144_v13  ;;  %239 = vmatpush.msra.mxu2 %v230_v37  ;;  %v221_v46 = vld [vmem:[%s2125_s7 + $0x20] sm:$0xff]  ;;  %v220_v47 = vld [vmem:[%s2125_s7 + $0x18] sm:$0xff]  ;;  %v219_v49 = vld [vmem:[%s2125_s7 + $0x10] sm:$0xff] }
  0x29   :  { %204 = vmatpush.msra.mxu1 %v185_v18  ;;  %260 = vmatpush.msra.mxu3 %v230_v37  ;;  %v1559_v48 = vld [vmem:[%s2122_s4] ss:$0 sm:$0xff]  ;;  %v218_v53 = vld [vmem:[%s2125_s7 + $0x8] sm:$0xff]  ;;  %v680_v14 = vld [vmem:[#allocation8 + $0x4c0] sm:$0xff] }
  0x2a   :  { %164 = vmatpush.msra.mxu0 %v143_v15  ;;  %240 = vmatpush.msra.mxu2 %v229_v38  ;;  %v217_v54 = vld [vmem:[%s2125_s7] sm:$0xff]  ;;  %v1965_v55 = vld [vmem:[#allocation5] sm:$0xff]  ;;  %v628_v35 = vld [vmem:[#allocation8 + $0x320] sm:$0xff] }
  0x2b   :  { %205 = vmatpush.msra.mxu1 %v184_v20  ;;  %261 = vmatpush.msra.mxu3 %v229_v38  ;;  %v1560_v56 = vld [vmem:[%s2124_s6] ss:$0 sm:$0xff]  ;;  %v280_v59 = vld [vmem:[%s2127_s9 + $0x8] sm:$0xff] }
  0x2c   :  { %165 = vmatpush.msra.mxu0 %v142_v17  ;;  %241 = vmatpush.msra.mxu2 %v228_v39  ;;  %v279_v60 = vld [vmem:[%s2127_s9] sm:$0xff]  ;;  %v679_v13 = vld [vmem:[#allocation8 + $0x4b8] sm:$0xff]  ;;  %v668_v17 = vld [vmem:[#allocation8 + $0x460] sm:$0xff]  ;;  %s2139_s9 = sld [smem:[#allocation14_spill]] }
  0x2d   :  { %206 = vmatpush.msra.mxu1 %v183_v22  ;;  %262 = vmatpush.msra.mxu3 %v228_v39  ;;  %v1561_v61 = vld [vmem:[%s2126_s8] ss:$0 sm:$0xff]  ;;  %v678_v12 = vld [vmem:[#allocation8 + $0x4b0] sm:$0xff]  ;;  %v631_v38 = vld [vmem:[#allocation8 + $0x338] sm:$0xff] }
  0x2e   :  { %166 = vmatpush.msra.mxu0 %v141_v19  ;;  %242 = vmatpush.msra.mxu2 %v227_v40  ;;  %v681_v16 = vld [vmem:[#allocation8 + $0x4c8] sm:$0xff]  ;;  %v670_v20 = vld [vmem:[#allocation8 + $0x470] sm:$0xff] }
  0x2f   :  { %207 = vmatpush.msra.mxu1 %v182_v24  ;;  %263 = vmatpush.msra.mxu3 %v227_v40  ;;  %v669_v18 = vld [vmem:[#allocation8 + $0x468] sm:$0xff]  ;;  %v658_v22 = vld [vmem:[#allocation8 + $0x410] sm:$0xff]  ;;  %v659_v24 = vld [vmem:[#allocation8 + $0x418] sm:$0xff] }
  0x30   :  { %167 = vmatpush.msra.mxu0 %v140_v21  ;;  %243 = vmatpush.msra.mxu2 %v226_v41  ;;  %v671_v21 = vld [vmem:[#allocation8 + $0x478] sm:$0xff]  ;;  %v661_v26 = vld [vmem:[#allocation8 + $0x428] sm:$0xff]  ;;  %v630_v37 = vld [vmem:[#allocation8 + $0x330] sm:$0xff] }
  0x31   :  { %208 = vmatpush.msra.mxu1 %v181_v27  ;;  %264 = vmatpush.msra.mxu3 %v226_v41  ;;  %v648_v27 = vld [vmem:[#allocation8 + $0x3c0] sm:$0xff]  ;;  %v629_v36 = vld [vmem:[#allocation8 + $0x328] sm:$0xff]  ;;  %v618_v39 = vld [vmem:[#allocation8 + $0x2d0] sm:$0xff] }
  0x32   :  { %168 = vmatpush.msra.mxu0 %v139_v23  ;;  %244 = vmatpush.msra.mxu2 %v225_v42  ;;  %v619_v40 = vld [vmem:[#allocation8 + $0x2d8] sm:$0xff]  ;;  %v581_v4 = vld [vmem:[#allocation8 + $0x1a8] sm:$0xff] }
  0x33   :  { %209 = vmatpush.msra.mxu1 %v180_v29  ;;  %265 = vmatpush.msra.mxu3 %v225_v42  ;;  %v650_v29 = vld [vmem:[#allocation8 + $0x3d0] sm:$0xff]  ;;  %v620_v42 = vld [vmem:[#allocation8 + $0x2e0] sm:$0xff] }
  0x34   :  { %169 = vmatpush.msra.mxu0 %v138_v25  ;;  %245 = vmatpush.msra.mxu2 %v224_v43  ;;  %v660_v25 = vld [vmem:[#allocation8 + $0x420] sm:$0xff] }
  0x35   :  { %210 = vmatpush.msra.mxu1 %v179_v32  ;;  %266 = vmatpush.msra.mxu3 %v224_v43  ;;  %v639_v32 = vld [vmem:[#allocation8 + $0x378] sm:$0xff]  ;;  %v621_v43 = vld [vmem:[#allocation8 + $0x2e8] sm:$0xff] }
  0x36   :  { %170 = vmatpush.msra.mxu0 %v137_v28  ;;  %246 = vmatpush.msra.mxu2 %v223_v44  ;;  %v649_v28 = vld [vmem:[#allocation8 + $0x3c8] sm:$0xff] }
  0x37   :  { %211 = vmatpush.msra.mxu1 %v178_v33  ;;  %267 = vmatpush.msra.mxu3 %v223_v44  ;;  %v640_v33 = vld [vmem:[#allocation8 + $0x380] sm:$0xff] }
  0x38   :  { %171 = vmatpush.msra.mxu0 %v136_v30  ;;  %247 = vmatpush.msra.mxu2 %v222_v45  ;;  %v651_v30 = vld [vmem:[#allocation8 + $0x3d8] sm:$0xff] }
  0x39   :  { %172 = vmatmul.f32.vlgmr.msra.gmra.mxu0 %v135_v31  ;;  %212 = vmatpush.msra.mxu1 %v177_v34  ;;  %v638_v31 = vld [vmem:[#allocation8 + $0x370] sm:$0xff]  ;;  %v641_v34 = vld [vmem:[#allocation8 + $0x388] sm:$0xff] }
  0x3a   :  { %268 = vmatpush.msra.mxu3 %v222_v45  ;;  %248 = vmatpush.msra.mxu2 %v221_v46  ;;  %v608_v45 = vld [vmem:[#allocation8 + $0x280] sm:$0xff] }
  0x3b   :  { %299 = vmatpush.msrb.mxu1 %v280_v59  ;;  %728 = vmatpush.msrb.mxu0 %v680_v14  ;;  %v560_v14 = vld [vmem:[#allocation8 + $0x100] sm:$0xff] }
  0x3c   :  { %269 = vmatpush.msra.mxu3 %v221_v46  ;;  %249 = vmatpush.msra.mxu2 %v220_v47  ;;  %v609_v46 = vld [vmem:[#allocation8 + $0x288] sm:$0xff] }
  0x3d   :  { %300 = vmatpush.msrb.mxu1 %v279_v60  ;;  %729 = vmatpush.msrb.mxu0 %v670_v20  ;;  %v550_v20 = vld [vmem:[#allocation8 + $0xb0] sm:$0xff] }
  0x3e   :  { %270 = vmatpush.msra.mxu3 %v220_v47  ;;  %250 = vmatpush.msra.mxu2 %v219_v49  ;;  %v610_v47 = vld [vmem:[#allocation8 + $0x290] sm:$0xff] }
  0x3f   :  { %730 = vmatpush.msrb.mxu0 %v660_v25  ;;  %v528_v25 = vld [vmem:[#allocation8] sm:$0xff] }
  0x40   :  { %271 = vmatpush.msra.mxu3 %v219_v49  ;;  %251 = vmatpush.msra.mxu2 %v218_v53 }
  0x41   :  { %731 = vmatpush.msrb.mxu0 %v650_v29  ;;  %v531_v29 = vld [vmem:[#allocation8 + $0x18] sm:$0xff] }
  0x42   :  { %272 = vmatpush.msra.mxu3 %v218_v53  ;;  %252 = vmatpush.msra.mxu2 %v217_v54  ;;  %v600_v53 = vld [vmem:[#allocation8 + $0x240] sm:$0xff] }
  0x43   :  { %732 = vmatpush.msrb.mxu0 %v640_v33  ;;  %v685_v33 = vld [vmem:[#allocation8 + $0x4e8] sm:$0xff] }
  0x44   :  { %273 = vmatpush.msra.mxu3 %v217_v54  ;;  %688 = vmatpush.msrb.mxu2 %v678_v12  ;;  %v601_v54 = vld [vmem:[#allocation8 + $0x248] sm:$0xff]  ;;  %v558_v12 = vld [vmem:[#allocation8 + $0xf0] sm:$0xff] }
  0x45   :  { %274 = vmatmul.f32.vlgmr.msra.gmra.mxu3 %v1965_v55  ;;  %733 = vmatpush.msrb.mxu0 %v630_v37  ;;  %v662_v37 = vld [vmem:[#allocation8 + $0x430] sm:$0xff] }
  0x46   :  { %708 = vmatpush.msrb.mxu3 %v679_v13  ;;  %689 = vmatpush.msrb.mxu2 %v668_v17  ;;  %v559_v13 = vld [vmem:[#allocation8 + $0xf8] sm:$0xff]  ;;  %v548_v17 = vld [vmem:[#allocation8 + $0xa0] sm:$0xff] }
  0x47   :  { %734 = vmatpush.msrb.mxu0 %v620_v42  ;;  %v653_v42 = vld [vmem:[#allocation8 + $0x3e8] sm:$0xff] }
  0x48   :  { %709 = vmatpush.msrb.mxu3 %v669_v18  ;;  %690 = vmatpush.msrb.mxu2 %v658_v22  ;;  %v549_v18 = vld [vmem:[#allocation8 + $0xa8] sm:$0xff]  ;;  %v539_v22 = vld [vmem:[#allocation8 + $0x58] sm:$0xff] }
  0x49   :  { %735 = vmatpush.msrb.mxu0 %v610_v47  ;;  %v644_v47 = vld [vmem:[#allocation8 + $0x3a0] sm:$0xff] }
  0x4a   :  { %710 = vmatpush.msrb.mxu3 %v659_v24  ;;  %691 = vmatpush.msrb.mxu2 %v648_v27  ;;  %v541_v24 = vld [vmem:[#allocation8 + $0x68] sm:$0xff] }
  0x4b   :  { %736 = vmatpush.msrb.mxu0 %v600_v53  ;;  %v622_v53 = vld [vmem:[#allocation8 + $0x2f0] sm:$0xff] }
  0x4c   :  { %711 = vmatpush.msrb.mxu3 %v649_v28  ;;  %692 = vmatpush.msrb.mxu2 %v638_v31  ;;  %v530_v28 = vld [vmem:[#allocation8 + $0x10] sm:$0xff]  ;;  %v683_v31 = vld [vmem:[#allocation8 + $0x4d8] sm:$0xff] }
  0x4e   :  { %712 = vmatpush.msrb.mxu3 %v639_v32  ;;  %693 = vmatpush.msrb.mxu2 %v628_v35  ;;  %v684_v32 = vld [vmem:[#allocation8 + $0x4e0] sm:$0xff]  ;;  %v673_v35 = vld [vmem:[#allocation8 + $0x488] sm:$0xff] }
  0x50   :  { %713 = vmatpush.msrb.mxu3 %v629_v36  ;;  %694 = vmatpush.msrb.mxu2 %v618_v39  ;;  %v674_v36 = vld [vmem:[#allocation8 + $0x490] sm:$0xff]  ;;  %v664_v39 = vld [vmem:[#allocation8 + $0x440] sm:$0xff] }
  0x52   :  { %714 = vmatpush.msrb.mxu3 %v619_v40  ;;  %695 = vmatpush.msrb.mxu2 %v608_v45  ;;  %v665_v40 = vld [vmem:[#allocation8 + $0x448] sm:$0xff]  ;;  %v642_v45 = vld [vmem:[#allocation8 + $0x390] sm:$0xff] }
  0x54   :  { %715 = vmatpush.msrb.mxu3 %v609_v46  ;;  %v643_v46 = vld [vmem:[#allocation8 + $0x398] sm:$0xff] }
  0xb6   :  { %v173_v50 = vpop.f32.mrf.mxu0 }
  0xb7   :  { %v174_v51 = vadd.f32 %v1559_v48, %v173_v50  ;;  %v611_v48 = vld [vmem:[#allocation8 + $0x298] sm:$0xff]  ;;  %v598_v50 = vld [vmem:[#allocation8 + $0x230] sm:$0xff] }
  0xb8   :  { %696 = vmatpush.msrb.mxu2 %v598_v50  ;;  %v633_v50 = vld [vmem:[#allocation8 + $0x348] sm:$0xff] }
  0xb9   :  { %v176_v52 = vmax.f32 %v174_v51, 0.0  ;;  %v599_v51 = vld [vmem:[#allocation8 + $0x238] sm:$0xff] }
  0xba   :  { %716 = vmatpush.msrb.mxu3 %v599_v51  ;;  %v634_v51 = vld [vmem:[#allocation8 + $0x350] sm:$0xff] }
  0xbb   :  { %213 = vmatmul.f32.vlgmr.msra.gmra.mxu1 %v176_v52 }
  0xbc   :  { %322 = vmatpush.msra.mxu1 %v280_v59  ;;  %v588_v59 = vld [vmem:[#allocation8 + $0x1e0] sm:$0xff] }
  0xbd   :  { %697 = vmatpush.msrb.mxu2 %v588_v59  ;;  %v612_v59 = vld [vmem:[#allocation8 + $0x2a0] sm:$0xff] }
  0xbe   :  { %323 = vmatpush.msra.mxu1 %v279_v60  ;;  %v589_v60 = vld [vmem:[#allocation8 + $0x1e8] sm:$0xff] }
  0xbf   :  { %717 = vmatpush.msrb.mxu3 %v589_v60  ;;  %v613_v60 = vld [vmem:[#allocation8 + $0x2a8] sm:$0xff] }
  0xc8   :  { %v275_v0 = vpop.f32.mrf.mxu3 }
  0xc9   :  { %v276_v1 = vadd.f32 %v1561_v61, %v275_v0  ;;  %v578_v0 = vld [vmem:[#allocation8 + $0x190] sm:$0xff] }
  0xca   :  { %698 = vmatpush.msrb.mxu2 %v578_v0  ;;  %v603_v0 = vld [vmem:[#allocation8 + $0x258] sm:$0xff] }
 0x138   :  { %v214_v57 = vpop.f32.mrf.mxu1 }
 0x139   :  { %v1971_v58 = vadd.f32 %v1560_v56, %v214_v57 }
 0x13b   :  { %253 = vmatmul.f32.vlgmr.msra.gmra.mxu2 %v1971_v58 }
 0x1be   :  { %v254_v62 = vpop.f32.mrf.mxu2 }
 0x1bf   :  { %v255_v63 = vadd.f32 %v1561_v61, %v254_v62  ;;  %v590_v61 = vld [vmem:[#allocation8 + $0x1f0] sm:$0xff]  ;;  %v591_v62 = vld [vmem:[#allocation8 + $0x1f8] sm:$0xff] }
 0x1c0   :  { %737 = vmatpush.msrb.mxu0 %v590_v61  ;;  %v614_v61 = vld [vmem:[#allocation8 + $0x2b0] sm:$0xff] }
 0x1c1   :  { %1564 = vtanh.f32 %v255_v63 }
 0x1c2   :  { %1566 = vtanh.f32 %v276_v1  ;;  %v579_v1 = vld [vmem:[#allocation8 + $0x198] sm:$0xff] }
 0x1c3   :  { %718 = vmatpush.msrb.mxu3 %v579_v1  ;;  %v604_v1 = vld [vmem:[#allocation8 + $0x260] sm:$0xff] }
 0x1c7   :  { %v1565_v2 = vpop.eup %1564 }
 0x1c8   :  { %1546 = vmatmul.msk.f32.vlgmr.msrb.gmra.mxu1 %vm281_vm0, %v1565_v2  ;;  %v1567_v3 = vpop.eup %1566 }
 0x1c9   :  { %748 = vmatpush.msrb.mxu1 %v681_v16  ;;  %v561_v16 = vld [vmem:[#allocation8 + $0x108] sm:$0xff] }
 0x1cb   :  { %749 = vmatpush.msrb.mxu1 %v671_v21  ;;  %v551_v21 = vld [vmem:[#allocation8 + $0xb8] sm:$0xff] }
 0x1cd   :  { %750 = vmatpush.msrb.mxu1 %v661_v26  ;;  %v529_v26 = vld [vmem:[#allocation8 + $0x8] sm:$0xff] }
 0x1cf   :  { %751 = vmatpush.msrb.mxu1 %v651_v30  ;;  %v682_v30 = vld [vmem:[#allocation8 + $0x4d0] sm:$0xff] }
 0x1d0   :  { %1547 = vmatmul.msk.f32.vlgmr.msra.gmra.mxu1 %vm281_vm0, %v1567_v3  ;;  %v580_v3 = vld [vmem:[#allocation8 + $0x1a0] sm:$0xff] }
 0x1d1   :  { %752 = vmatpush.msrb.mxu1 %v641_v34  ;;  %738 = vmatpush.msrb.mxu0 %v580_v3  ;;  %v672_v34 = vld [vmem:[#allocation8 + $0x480] sm:$0xff] }
 0x1d2   :  { %v592_v3 = vld [vmem:[#allocation8 + $0x200] sm:$0xff] }
 0x1d3   :  { %753 = vmatpush.msrb.mxu1 %v631_v38  ;;  %v663_v38 = vld [vmem:[#allocation8 + $0x438] sm:$0xff] }
 0x1d5   :  { %754 = vmatpush.msrb.mxu1 %v621_v43  ;;  %v654_v43 = vld [vmem:[#allocation8 + $0x3f0] sm:$0xff] }
 0x1d7   :  { %755 = vmatpush.msrb.mxu1 %v611_v48  ;;  %v645_v48 = vld [vmem:[#allocation8 + $0x3a8] sm:$0xff] }
 0x1d9   :  { %756 = vmatpush.msrb.mxu1 %v601_v54  ;;  %v623_v54 = vld [vmem:[#allocation8 + $0x2f8] sm:$0xff] }
 0x1db   :  { %757 = vmatpush.msrb.mxu1 %v591_v62  ;;  %v615_v62 = vld [vmem:[#allocation8 + $0x2b8] sm:$0xff] }
 0x1dd   :  { %758 = vmatpush.msrb.mxu1 %v581_v4  ;;  %v593_v4 = vld [vmem:[#allocation8 + $0x208] sm:$0xff] }
 0x245   :  { %v302_v5 = vpop.f32.mrf.mxu1 }
 0x24d   :  { %v325_v6 = vpop.f32.mrf.mxu1 }
 0x24e   :  { %v328_v7 = vmax.f32 %v302_v5, %v325_v6 }
 0x250   :  { %v329_v8 = vsub.f32 %v302_v5, %v328_v7  ;;  %v332_v9 = vsub.f32 %v325_v6, %v328_v7  ;;  %v568_v6 = vld [vmem:[#allocation8 + $0x140] sm:$0xff]  ;;  %v569_v7 = vld [vmem:[#allocation8 + $0x148] sm:$0xff] }
 0x251   :  { %699 = vmatpush.msrb.mxu2 %v568_v6  ;;  %719 = vmatpush.msrb.mxu3 %v569_v7  ;;  %v595_v6 = vld [vmem:[#allocation8 + $0x218] sm:$0xff]  ;;  %v582_v7 = vld [vmem:[#allocation8 + $0x1b0] sm:$0xff] }
 0x252   :  { %v330_v10 = vmul.f32 1.442695, %v329_v8  ;;  %v333_v11 = vmul.f32 1.442695, %v332_v9  ;;  %v570_v9 = vld [vmem:[#allocation8 + $0x150] sm:$0xff] }
 0x253   :  { %739 = vmatpush.msrb.mxu0 %v570_v9  ;;  %700 = vmatpush.msrb.mxu2 %v558_v12  ;;  %v584_v9 = vld [vmem:[#allocation8 + $0x1c0] sm:$0xff]  ;;  %v573_v12 = vld [vmem:[#allocation8 + $0x168] sm:$0xff] }
 0x254   :  { %1568 = vpow2.f32 %v330_v10  ;;  %720 = vmatpush.msrb.mxu3 %v559_v13  ;;  %v574_v13 = vld [vmem:[#allocation8 + $0x170] sm:$0xff] }
 0x255   :  { %1570 = vpow2.f32 %v333_v11  ;;  %v571_v11 = vld [vmem:[#allocation8 + $0x158] sm:$0xff]  ;;  %740 = vmatpush.msrb.mxu0 %v560_v14  ;;  %701 = vmatpush.msrb.mxu2 %v548_v17 }
 0x256   :  { %759 = vmatpush.msrb.mxu1 %v571_v11  ;;  %721 = vmatpush.msrb.mxu3 %v549_v18  ;;  %v572_v11 = vld [vmem:[#allocation8 + $0x160] sm:$0xff]  ;;  %v575_v14 = vld [vmem:[#allocation8 + $0x178] sm:$0xff] }
 0x257   :  { %741 = vmatpush.msrb.mxu0 %v550_v20  ;;  %v563_v17 = vld [vmem:[#allocation8 + $0x118] sm:$0xff]  ;;  %v564_v18 = vld [vmem:[#allocation8 + $0x120] sm:$0xff]  ;;  %v565_v20 = vld [vmem:[#allocation8 + $0x128] sm:$0xff] }
 0x258   :  { %760 = vmatpush.msrb.mxu1 %v561_v16  ;;  %722 = vmatpush.msrb.mxu3 %v539_v22  ;;  %v562_v16 = vld [vmem:[#allocation8 + $0x110] sm:$0xff] }
 0x259   :  { %v554_v22 = vld [vmem:[#allocation8 + $0xd0] sm:$0xff] }
 0x25a   :  { %v1983_v15 = vpop.eup %1568  ;;  %761 = vmatpush.msrb.mxu1 %v551_v21  ;;  %723 = vmatpush.msrb.mxu3 %v529_v26  ;;  %v552_v21 = vld [vmem:[#allocation8 + $0xc0] sm:$0xff] }
 0x25b   :  { %v1985_v19 = vpop.eup %1570  ;;  %v544_v26 = vld [vmem:[#allocation8 + $0x80] sm:$0xff] }
 0x25c   :  { %v1989_v23 = vadd.f32 %v1985_v19, %v1983_v15  ;;  %762 = vmatpush.msrb.mxu1 %v541_v24  ;;  %788 = vmatpush.msra.mxu3 %v683_v31  ;;  %v542_v24 = vld [vmem:[#allocation8 + $0x70] sm:$0xff]  ;;  %v535_v31 = vld [vmem:[#allocation8 + $0x38] sm:$0xff] }
 0x25e   :  { %1572 = vrcp.f32 %v1989_v23  ;;  %v347_v52 = vand.u32 2147483648, %v1989_v23  ;;  %v345_v57 = vand.u32 2147483647, %v1989_v23  ;;  %vm341_vm2 = vweird.f32 %v1989_v23  ;;  %763 = vmatpush.msrb.mxu1 %v531_v29  ;;  %789 = vmatpush.msra.mxu3 %v673_v35  ;;  %v533_v29 = vld [vmem:[#allocation8 + $0x28] sm:$0xff] }
 0x260   :  { %v348_v2 = vor.u32 1.1754944e-38, %v347_v52  ;;  %vm346_vm4 = vcmp.eq.f32.partialorder %v345_v57, 8.507059e+37  ;;  %828 = vmatpush.msra.mxu1 %v685_v33  ;;  %790 = vmatpush.msra.mxu3 %v663_v38  ;;  %v635_v52 = vld [vmem:[#allocation8 + $0x358] sm:$0xff]  ;;  %v625_v57 = vld [vmem:[#allocation8 + $0x308] sm:$0xff]  ;;  %v686_v38 = vld [vmem:[#allocation8 + $0x4f0] sm:$0xff] }
 0x262   :  { %791 = vmatpush.msra.mxu3 %v653_v42  ;;  %v676_v42 = vld [vmem:[#allocation8 + $0x4a0] sm:$0xff] }
 0x264   :  { %v1573_v41 = vpop.eup %1572  ;;  %792 = vmatpush.msra.mxu3 %v643_v46  ;;  %v498_v46 = vld [vmem:[#allocation7 + $0x410] sm:$0xff] }
 0x265   :  { %v337_v44 = vmul.f32 %v1573_v41, %v1989_v23  ;;  %vm342_vm1 = vweird.f32 %v1573_v41  ;;  %v540_v23 = vld [vmem:[#allocation8 + $0x60] sm:$0xff] }
 0x266   :  { %vm343_vm3 = vmor %vm341_vm2, %vm342_vm1  ;;  %742 = vmatpush.msrb.mxu0 %v540_v23  ;;  %793 = vmatpush.msra.mxu3 %v633_v50  ;;  %v555_v23 = vld [vmem:[#allocation8 + $0xd8] sm:$0xff]  ;;  %v488_v50 = vld [vmem:[#allocation7 + $0x3c0] sm:$0xff] }
 0x267   :  { %v338_v49 = vsub.f32 1.0, %v337_v44  ;;  %v655_v44 = vld [vmem:[#allocation8 + $0x3f8] sm:$0xff] }
 0x268   :  { %743 = vmatpush.msrb.mxu0 %v530_v28  ;;  %794 = vmatpush.msra.mxu3 %v623_v54  ;;  %v532_v28 = vld [vmem:[#allocation8 + $0x20] sm:$0xff]  ;;  %v478_v54 = vld [vmem:[#allocation7 + $0x370] sm:$0xff] }
 0x269   :  { %v339_v56 = vmul.f32 %v1573_v41, %v338_v49  ;;  %v632_v49 = vld [vmem:[#allocation8 + $0x340] sm:$0xff] }
 0x26a   :  { %808 = vmatpush.msra.mxu0 %v684_v32  ;;  %795 = vmatpush.msra.mxu3 %v613_v60  ;;  %v468_v60 = vld [vmem:[#allocation7 + $0x320] sm:$0xff] }
 0x26b   :  { %v340_v63 = vadd.f32 %v1573_v41, %v339_v56  ;;  %v624_v56 = vld [vmem:[#allocation8 + $0x300] sm:$0xff] }
 0x26c   :  { %809 = vmatpush.msra.mxu0 %v674_v36  ;;  %796 = vmatpush.msra.mxu3 %v603_v0  ;;  %v458_v0 = vld [vmem:[#allocation7 + $0x2d0] sm:$0xff] }
 0x26d   :  { %v344_v5 = vsel %vm343_vm3, %v1573_v41, %v340_v63  ;;  %v652_v41 = vld [vmem:[#allocation8 + $0x3e0] sm:$0xff]  ;;  %v602_v63 = vld [vmem:[#allocation8 + $0x250] sm:$0xff] }
 0x26e   :  { %v349_v8 = vsel %vm346_vm4, %v348_v2, %v344_v5  ;;  %810 = vmatpush.msra.mxu0 %v664_v39  ;;  %v605_v2 = vld [vmem:[#allocation8 + $0x268] sm:$0xff]  ;;  %v594_v5 = vld [vmem:[#allocation8 + $0x210] sm:$0xff]  ;;  %797 = vmatpush.msra.mxu3 %v593_v4  ;;  %v687_v39 = vld [vmem:[#allocation8 + $0x4f8] sm:$0xff] }
 0x26f   :  { %v351_v10 = vmul.f32 %v1983_v15, %v349_v8  ;;  %v538_v15 = vld [vmem:[#allocation8 + $0x50] sm:$0xff]  ;;  %v358_v27 = vmul.f32 %v1985_v19, %v349_v8  ;;  %v675_v19 = vld [vmem:[#allocation8 + $0x498] sm:$0xff]  ;;  %v448_v4 = vld [vmem:[#allocation7 + $0x280] sm:$0xff] }
 0x270   :  { %702 = vmatpush.msrb.mxu2 %v538_v15  ;;  %829 = vmatpush.msra.mxu1 %v675_v19  ;;  %v583_v8 = vld [vmem:[#allocation8 + $0x1b8] sm:$0xff]  ;;  %v553_v15 = vld [vmem:[#allocation8 + $0xc8] sm:$0xff] }
 0x271   :  { %354 = vperm.xlu0 %1558, %v351_v10   ;;  %811 = vmatpush.msra.mxu0 %v654_v43  ;;  %v585_v10 = vld [vmem:[#allocation8 + $0x1c8] sm:$0xff] }
 0x272   :  { %703 = vmatpush.msrb.mxu2 %v528_v25  ;;  %830 = vmatpush.msra.mxu1 %v665_v40  ;;  %v543_v25 = vld [vmem:[#allocation8 + $0x78] sm:$0xff]  ;;  %v518_v40 = vld [vmem:[#allocation7 + $0x4b0] sm:$0xff]  ;;  %v677_v43 = vld [vmem:[#allocation8 + $0x4a8] sm:$0xff] }
 0x273   :  { %812 = vmatpush.msra.mxu0 %v644_v47  ;;  %798 = vmatpush.msra.mxu3 %v583_v8  ;;  %v499_v47 = vld [vmem:[#allocation7 + $0x418] sm:$0xff]  ;;  %v438_v8 = vld [vmem:[#allocation7 + $0x230] sm:$0xff] }
 0x274   :  { %768 = vmatpush.msra.mxu2 %v682_v30  ;;  %831 = vmatpush.msra.mxu1 %v655_v44  ;;  %v534_v30 = vld [vmem:[#allocation8 + $0x30] sm:$0xff]  ;;  %v509_v44 = vld [vmem:[#allocation7 + $0x468] sm:$0xff] }
 0x275   :  { %813 = vmatpush.msra.mxu0 %v634_v51  ;;  %799 = vmatpush.msra.mxu3 %v573_v12  ;;  %v489_v51 = vld [vmem:[#allocation7 + $0x3c8] sm:$0xff]  ;;  %v428_v12 = vld [vmem:[#allocation7 + $0x1e0] sm:$0xff] }
 0x276   :  { %769 = vmatpush.msra.mxu2 %v672_v34  ;;  %832 = vmatpush.msra.mxu1 %v645_v48  ;;  %v656_v48 = vld [vmem:[#allocation8 + $0x400] sm:$0xff] }
 0x277   :  { %814 = vmatpush.msra.mxu0 %v624_v56  ;;  %800 = vmatpush.msra.mxu3 %v563_v17  ;;  %v479_v56 = vld [vmem:[#allocation7 + $0x378] sm:$0xff]  ;;  %v418_v17 = vld [vmem:[#allocation7 + $0x190] sm:$0xff] }
 0x278   :  { %770 = vmatpush.msra.mxu2 %v662_v37  ;;  %833 = vmatpush.msra.mxu1 %v635_v52  ;;  %v646_v52 = vld [vmem:[#allocation8 + $0x3b0] sm:$0xff] }
 0x279   :  { %361 = vperm.xlu0 %1558, %v358_v27   ;;  %815 = vmatpush.msra.mxu0 %v614_v61  ;;  %v545_v27 = vld [vmem:[#allocation8 + $0x88] sm:$0xff] }
 0x27a   :  { %771 = vmatpush.msra.mxu2 %v652_v41  ;;  %834 = vmatpush.msra.mxu1 %v625_v57  ;;  %v519_v41 = vld [vmem:[#allocation7 + $0x4b8] sm:$0xff]  ;;  %v636_v57 = vld [vmem:[#allocation8 + $0x360] sm:$0xff]  ;;  %v469_v61 = vld [vmem:[#allocation7 + $0x328] sm:$0xff] }
 0x27b   :  { %816 = vmatpush.msra.mxu0 %v604_v1  ;;  %801 = vmatpush.msra.mxu3 %v553_v15  ;;  %v459_v1 = vld [vmem:[#allocation7 + $0x2d8] sm:$0xff]  ;;  %v408_v15 = vld [vmem:[#allocation7 + $0x140] sm:$0xff] }
 0x27c   :  { %772 = vmatpush.msra.mxu2 %v642_v45  ;;  %835 = vmatpush.msra.mxu1 %v615_v62  ;;  %v667_v45 = vld [vmem:[#allocation8 + $0x458] sm:$0xff]  ;;  %v626_v62 = vld [vmem:[#allocation8 + $0x310] sm:$0xff] }
 0x27d   :  { %817 = vmatpush.msra.mxu0 %v594_v5  ;;  %802 = vmatpush.msra.mxu3 %v543_v25  ;;  %v449_v5 = vld [vmem:[#allocation7 + $0x288] sm:$0xff]  ;;  %v398_v25 = vld [vmem:[#allocation7 + $0xf0] sm:$0xff] }
 0x27e   :  { %773 = vmatpush.msra.mxu2 %v632_v49  ;;  %836 = vmatpush.msra.mxu1 %v605_v2  ;;  %v657_v49 = vld [vmem:[#allocation8 + $0x408] sm:$0xff]  ;;  %v616_v2 = vld [vmem:[#allocation8 + $0x2c0] sm:$0xff] }
 0x27f   :  { %818 = vmatpush.msra.mxu0 %v584_v9  ;;  %803 = vmatpush.msra.mxu3 %v533_v29  ;;  %v439_v9 = vld [vmem:[#allocation7 + $0x238] sm:$0xff]  ;;  %v388_v29 = vld [vmem:[#allocation7 + $0xa0] sm:$0xff] }
 0x280   :  { %774 = vmatpush.msra.mxu2 %v622_v53  ;;  %837 = vmatpush.msra.mxu1 %v595_v6  ;;  %v647_v53 = vld [vmem:[#allocation8 + $0x3b8] sm:$0xff]  ;;  %v606_v6 = vld [vmem:[#allocation8 + $0x270] sm:$0xff] }
 0x281   :  { %819 = vmatpush.msra.mxu0 %v574_v13  ;;  %v429_v13 = vld [vmem:[#allocation7 + $0x1e8] sm:$0xff] }
 0x282   :  { %775 = vmatpush.msra.mxu2 %v612_v59  ;;  %838 = vmatpush.msra.mxu1 %v585_v10  ;;  %v637_v59 = vld [vmem:[#allocation8 + $0x368] sm:$0xff]  ;;  %v596_v10 = vld [vmem:[#allocation8 + $0x220] sm:$0xff] }
 0x283   :  { %820 = vmatpush.msra.mxu0 %v564_v18  ;;  %v419_v18 = vld [vmem:[#allocation7 + $0x198] sm:$0xff] }
 0x284   :  { %776 = vmatpush.msra.mxu2 %v602_v63  ;;  %839 = vmatpush.msra.mxu1 %v575_v14  ;;  %v627_v63 = vld [vmem:[#allocation8 + $0x318] sm:$0xff]  ;;  %v586_v14 = vld [vmem:[#allocation8 + $0x1d0] sm:$0xff] }
 0x285   :  { %821 = vmatpush.msra.mxu0 %v554_v22  ;;  %v409_v22 = vld [vmem:[#allocation7 + $0x148] sm:$0xff] }
 0x286   :  { %777 = vmatpush.msra.mxu2 %v592_v3  ;;  %840 = vmatpush.msra.mxu1 %v565_v20  ;;  %v617_v3 = vld [vmem:[#allocation8 + $0x2c8] sm:$0xff]  ;;  %v576_v20 = vld [vmem:[#allocation8 + $0x180] sm:$0xff] }
 0x287   :  { %822 = vmatpush.msra.mxu0 %v544_v26  ;;  %v399_v26 = vld [vmem:[#allocation7 + $0xf8] sm:$0xff] }
 0x288   :  { %778 = vmatpush.msra.mxu2 %v582_v7  ;;  %841 = vmatpush.msra.mxu1 %v555_v23  ;;  %v607_v7 = vld [vmem:[#allocation8 + $0x278] sm:$0xff]  ;;  %v566_v23 = vld [vmem:[#allocation8 + $0x130] sm:$0xff] }
 0x289   :  { %823 = vmatpush.msra.mxu0 %v534_v30  ;;  %v389_v30 = vld [vmem:[#allocation7 + $0xa8] sm:$0xff] }
 0x28a   :  { %779 = vmatpush.msra.mxu2 %v572_v11  ;;  %842 = vmatpush.msra.mxu1 %v545_v27  ;;  %v597_v11 = vld [vmem:[#allocation8 + $0x228] sm:$0xff]  ;;  %v556_v27 = vld [vmem:[#allocation8 + $0xe0] sm:$0xff] }
 0x28c   :  { %780 = vmatpush.msra.mxu2 %v562_v16  ;;  %843 = vmatpush.msra.mxu1 %v535_v31  ;;  %v587_v16 = vld [vmem:[#allocation8 + $0x1d8] sm:$0xff]  ;;  %v546_v31 = vld [vmem:[#allocation8 + $0x90] sm:$0xff] }
 0x28e   :  { %781 = vmatpush.msra.mxu2 %v552_v21  ;;  %v577_v21 = vld [vmem:[#allocation8 + $0x188] sm:$0xff] }
 0x290   :  { %782 = vmatpush.msra.mxu2 %v542_v24  ;;  %v567_v24 = vld [vmem:[#allocation8 + $0x138] sm:$0xff] }
 0x292   :  { %783 = vmatpush.msra.mxu2 %v532_v28  ;;  %v557_v28 = vld [vmem:[#allocation8 + $0xe8] sm:$0xff] }
 0x2e3   :  { %v355_v32 = vpop.permute.xlu0 %354 }
 0x2e4   :  { %v357_v34 = vmul.f32 %v355_v32, %v1971_v58  ;;  %v547_v32 = vld [vmem:[#allocation8 + $0x98] sm:$0xff] }
 0x2eb   :  { %v362_v33 = vpop.permute.xlu0 %361 }
 0x2ec   :  { %v364_v35 = vmul.f32 %v362_v33, %v1965_v55  ;;  %v378_v33 = vld [vmem:[#allocation7 + $0x50] sm:$0xff] }
 0x2ee   :  { %v365_v36 = vadd.f32 %v364_v35, %v357_v34  ;;  %v379_v34 = vld [vmem:[#allocation7 + $0x58] sm:$0xff]  ;;  %v536_v35 = vld [vmem:[#allocation8 + $0x40] sm:$0xff] }
 0x2f0   :  { %v366_v19 = vadd.f32 %v365_v36, %v1971_v58  ;;  %v508_v58 = vld [vmem:[#allocation7 + $0x460] sm:$0xff]  ;;  %v537_v36 = vld [vmem:[#allocation8 + $0x48] sm:$0xff] }
 0x2f2   :  { %v2003_v37 = vadd.f32 %v366_v19, %v1965_v55  ;;  %v666_v55 = vld [vmem:[#allocation8 + $0x450] sm:$0xff]  ;;  %v368_v19 = vld [vmem:[#allocation7] sm:$0xff] }
 0x2f4   :  { %704 = vmatmul.f32.vlgmr.msrb.gmra.mxu2 %v2003_v37  ;;  %724 = vmatmul.f32.vlgmr.msrb.gmra.mxu3 %v2003_v37 }
 0x2f5   :  { %744 = vmatmul.f32.vlgmr.msrb.gmra.mxu0 %v2003_v37  ;;  %764 = vmatmul.f32.vlgmr.msrb.gmra.mxu1 %v2003_v37 }
 0x2f6   :  { %848 = vmatpush.msrb.mxu2 %v686_v38  ;;  %868 = vmatpush.msrb.mxu3 %v687_v39  ;;  %v369_v38 = vld [vmem:[#allocation7 + $0x8] sm:$0xff] }
 0x2f7   :  { %888 = vmatpush.msrb.mxu0 %v518_v40  ;;  %908 = vmatpush.msrb.mxu1 %v519_v41  ;;  %v2016_v39 = vld [vmem:[%s2139_s9] sm:$0xff]  ;;  %v520_v40 = vld [vmem:[#allocation7 + $0x4c0] sm:$0xff] }
 0x2f8   :  { %849 = vmatpush.msrb.mxu2 %v676_v42  ;;  %869 = vmatpush.msrb.mxu3 %v677_v43  ;;  %v521_v41 = vld [vmem:[#allocation7 + $0x4c8] sm:$0xff]  ;;  %v522_v42 = vld [vmem:[#allocation7 + $0x4d0] sm:$0xff]  ;;  %v523_v43 = vld [vmem:[#allocation7 + $0x4d8] sm:$0xff] }
 0x2f9   :  { %889 = vmatpush.msrb.mxu0 %v508_v58  ;;  %909 = vmatpush.msrb.mxu1 %v509_v44  ;;  %v510_v58 = vld [vmem:[#allocation7 + $0x470] sm:$0xff]  ;;  %v511_v44 = vld [vmem:[#allocation7 + $0x478] sm:$0xff] }
 0x2fa   :  { %850 = vmatpush.msrb.mxu2 %v666_v55  ;;  %870 = vmatpush.msrb.mxu3 %v667_v45  ;;  %v512_v55 = vld [vmem:[#allocation7 + $0x480] sm:$0xff]  ;;  %v513_v45 = vld [vmem:[#allocation7 + $0x488] sm:$0xff] }
 0x2fb   :  { %890 = vmatpush.msrb.mxu0 %v498_v46  ;;  %910 = vmatpush.msrb.mxu1 %v499_v47  ;;  %v500_v46 = vld [vmem:[#allocation7 + $0x420] sm:$0xff]  ;;  %v501_v47 = vld [vmem:[#allocation7 + $0x428] sm:$0xff] }
 0x2fc   :  { %851 = vmatpush.msrb.mxu2 %v656_v48  ;;  %871 = vmatpush.msrb.mxu3 %v657_v49  ;;  %v502_v48 = vld [vmem:[#allocation7 + $0x430] sm:$0xff] }
 0x2fd   :  { %891 = vmatpush.msrb.mxu0 %v488_v50  ;;  %911 = vmatpush.msrb.mxu1 %v489_v51  ;;  %v490_v49 = vld [vmem:[#allocation7 + $0x3d0] sm:$0xff]  ;;  %v491_v50 = vld [vmem:[#allocation7 + $0x3d8] sm:$0xff]  ;;  %v492_v51 = vld [vmem:[#allocation7 + $0x3e0] sm:$0xff] }
 0x2fe   :  { %784 = vmatmul.f32.vlgmr.msra.gmra.mxu2 %v2003_v37  ;;  %804 = vmatmul.f32.vlgmr.msra.gmra.mxu3 %v2003_v37 }
 0x2ff   :  { %824 = vmatmul.f32.vlgmr.msra.gmra.mxu0 %v2003_v37  ;;  %844 = vmatmul.f32.vlgmr.msra.gmra.mxu1 %v2003_v37 }
 0x300   :  { %852 = vmatpush.msrb.mxu2 %v646_v52  ;;  %872 = vmatpush.msrb.mxu3 %v647_v53  ;;  %v493_v52 = vld [vmem:[#allocation7 + $0x3e8] sm:$0xff]  ;;  %v480_v53 = vld [vmem:[#allocation7 + $0x380] sm:$0xff] }
 0x301   :  { %892 = vmatpush.msrb.mxu0 %v478_v54  ;;  %912 = vmatpush.msrb.mxu1 %v479_v56  ;;  %v481_v54 = vld [vmem:[#allocation7 + $0x388] sm:$0xff]  ;;  %v482_v56 = vld [vmem:[#allocation7 + $0x390] sm:$0xff] }
 0x302   :  { %853 = vmatpush.msrb.mxu2 %v636_v57  ;;  %873 = vmatpush.msrb.mxu3 %v637_v59  ;;  %v483_v57 = vld [vmem:[#allocation7 + $0x398] sm:$0xff]  ;;  %v470_v59 = vld [vmem:[#allocation7 + $0x330] sm:$0xff] }
 0x303   :  { %893 = vmatpush.msrb.mxu0 %v468_v60  ;;  %913 = vmatpush.msrb.mxu1 %v469_v61  ;;  %v471_v60 = vld [vmem:[#allocation7 + $0x338] sm:$0xff]  ;;  %v472_v61 = vld [vmem:[#allocation7 + $0x340] sm:$0xff] }
 0x304   :  { %854 = vmatpush.msrb.mxu2 %v626_v62  ;;  %874 = vmatpush.msrb.mxu3 %v627_v63  ;;  %v473_v62 = vld [vmem:[#allocation7 + $0x348] sm:$0xff]  ;;  %v460_v63 = vld [vmem:[#allocation7 + $0x2e0] sm:$0xff] }
 0x305   :  { %894 = vmatpush.msrb.mxu0 %v458_v0  ;;  %914 = vmatpush.msrb.mxu1 %v459_v1  ;;  %v461_v0 = vld [vmem:[#allocation7 + $0x2e8] sm:$0xff]  ;;  %v462_v1 = vld [vmem:[#allocation7 + $0x2f0] sm:$0xff] }
 0x306   :  { %855 = vmatpush.msrb.mxu2 %v616_v2  ;;  %875 = vmatpush.msrb.mxu3 %v617_v3  ;;  %v463_v2 = vld [vmem:[#allocation7 + $0x2f8] sm:$0xff]  ;;  %v450_v3 = vld [vmem:[#allocation7 + $0x290] sm:$0xff] }
 0x307   :  { %895 = vmatpush.msrb.mxu0 %v448_v4  ;;  %915 = vmatpush.msrb.mxu1 %v449_v5  ;;  %v451_v4 = vld [vmem:[#allocation7 + $0x298] sm:$0xff]  ;;  %v452_v5 = vld [vmem:[#allocation7 + $0x2a0] sm:$0xff] }
 0x308   :  { %856 = vmatpush.msrb.mxu2 %v606_v6  ;;  %876 = vmatpush.msrb.mxu3 %v607_v7  ;;  %v453_v6 = vld [vmem:[#allocation7 + $0x2a8] sm:$0xff]  ;;  %v440_v7 = vld [vmem:[#allocation7 + $0x240] sm:$0xff] }
 0x309   :  { %896 = vmatpush.msrb.mxu0 %v438_v8  ;;  %916 = vmatpush.msrb.mxu1 %v439_v9  ;;  %v441_v8 = vld [vmem:[#allocation7 + $0x248] sm:$0xff]  ;;  %v442_v9 = vld [vmem:[#allocation7 + $0x250] sm:$0xff] }
 0x30a   :  { %857 = vmatpush.msrb.mxu2 %v596_v10  ;;  %877 = vmatpush.msrb.mxu3 %v597_v11  ;;  %v443_v10 = vld [vmem:[#allocation7 + $0x258] sm:$0xff]  ;;  %v430_v11 = vld [vmem:[#allocation7 + $0x1f0] sm:$0xff] }
 0x30b   :  { %897 = vmatpush.msrb.mxu0 %v428_v12  ;;  %917 = vmatpush.msrb.mxu1 %v429_v13  ;;  %v431_v12 = vld [vmem:[#allocation7 + $0x1f8] sm:$0xff]  ;;  %v432_v13 = vld [vmem:[#allocation7 + $0x200] sm:$0xff] }
 0x30c   :  { %858 = vmatpush.msrb.mxu2 %v586_v14  ;;  %878 = vmatpush.msrb.mxu3 %v587_v16  ;;  %v433_v14 = vld [vmem:[#allocation7 + $0x208] sm:$0xff]  ;;  %v420_v16 = vld [vmem:[#allocation7 + $0x1a0] sm:$0xff] }
 0x30d   :  { %898 = vmatpush.msrb.mxu0 %v418_v17  ;;  %918 = vmatpush.msrb.mxu1 %v419_v18  ;;  %v421_v17 = vld [vmem:[#allocation7 + $0x1a8] sm:$0xff]  ;;  %v422_v18 = vld [vmem:[#allocation7 + $0x1b0] sm:$0xff] }
 0x30e   :  { %859 = vmatpush.msrb.mxu2 %v576_v20  ;;  %879 = vmatpush.msrb.mxu3 %v577_v21  ;;  %v423_v20 = vld [vmem:[#allocation7 + $0x1b8] sm:$0xff]  ;;  %v410_v21 = vld [vmem:[#allocation7 + $0x150] sm:$0xff] }
 0x30f   :  { %899 = vmatpush.msrb.mxu0 %v408_v15  ;;  %919 = vmatpush.msrb.mxu1 %v409_v22  ;;  %v411_v15 = vld [vmem:[#allocation7 + $0x158] sm:$0xff]  ;;  %v412_v22 = vld [vmem:[#allocation7 + $0x160] sm:$0xff] }
 0x310   :  { %860 = vmatpush.msrb.mxu2 %v566_v23  ;;  %880 = vmatpush.msrb.mxu3 %v567_v24  ;;  %v413_v23 = vld [vmem:[#allocation7 + $0x168] sm:$0xff]  ;;  %v400_v24 = vld [vmem:[#allocation7 + $0x100] sm:$0xff] }
 0x311   :  { %900 = vmatpush.msrb.mxu0 %v398_v25  ;;  %920 = vmatpush.msrb.mxu1 %v399_v26  ;;  %v401_v25 = vld [vmem:[#allocation7 + $0x108] sm:$0xff]  ;;  %v402_v26 = vld [vmem:[#allocation7 + $0x110] sm:$0xff] }
 0x312   :  { %861 = vmatpush.msrb.mxu2 %v556_v27  ;;  %881 = vmatpush.msrb.mxu3 %v557_v28  ;;  %v403_v27 = vld [vmem:[#allocation7 + $0x118] sm:$0xff]  ;;  %v390_v28 = vld [vmem:[#allocation7 + $0xb0] sm:$0xff] }
 0x313   :  { %901 = vmatpush.msrb.mxu0 %v388_v29  ;;  %921 = vmatpush.msrb.mxu1 %v389_v30  ;;  %v391_v29 = vld [vmem:[#allocation7 + $0xb8] sm:$0xff]  ;;  %v392_v30 = vld [vmem:[#allocation7 + $0xc0] sm:$0xff] }
 0x314   :  { %862 = vmatpush.msrb.mxu2 %v546_v31  ;;  %882 = vmatpush.msrb.mxu3 %v547_v32  ;;  %v393_v31 = vld [vmem:[#allocation7 + $0xc8] sm:$0xff]  ;;  %v380_v32 = vld [vmem:[#allocation7 + $0x60] sm:$0xff] }
 0x315   :  { %902 = vmatpush.msrb.mxu0 %v378_v33  ;;  %922 = vmatpush.msrb.mxu1 %v379_v34  ;;  %v381_v33 = vld [vmem:[#allocation7 + $0x68] sm:$0xff]  ;;  %v382_v34 = vld [vmem:[#allocation7 + $0x70] sm:$0xff] }
 0x316   :  { %863 = vmatpush.msrb.mxu2 %v536_v35  ;;  %883 = vmatpush.msrb.mxu3 %v537_v36  ;;  %v383_v35 = vld [vmem:[#allocation7 + $0x78] sm:$0xff]  ;;  %v370_v36 = vld [vmem:[#allocation7 + $0x10] sm:$0xff] }
 0x317   :  { %903 = vmatpush.msrb.mxu0 %v368_v19  ;;  %923 = vmatpush.msrb.mxu1 %v369_v38  ;;  %v371_v19 = vld [vmem:[#allocation7 + $0x18] sm:$0xff]  ;;  %v372_v38 = vld [vmem:[#allocation7 + $0x20] sm:$0xff] }
 0x318   :  { %864 = vmatmul.f32.vlgmr.msrb.gmra.mxu2 %v2003_v37  ;;  %884 = vmatmul.f32.vlgmr.msrb.gmra.mxu3 %v2003_v37  ;;  %v503_v37 = vld [vmem:[#allocation7 + $0x438] sm:$0xff] }
 0x319   :  { %904 = vmatmul.f32.vlgmr.msrb.gmra.mxu0 %v2016_v39  ;;  %924 = vmatmul.f32.vlgmr.msrb.gmra.mxu1 %v2016_v39 }
 0x31a   :  { %928 = vmatpush.msra.mxu2 %v520_v40  ;;  %948 = vmatpush.msra.mxu3 %v521_v41  ;;  %v373_v40 = vld [vmem:[#allocation7 + $0x28] sm:$0xff]  ;;  %v524_v41 = vld [vmem:[#allocation7 + $0x4e0] sm:$0xff] }
 0x31b   :  { %968 = vmatpush.msra.mxu0 %v522_v42  ;;  %988 = vmatpush.msra.mxu1 %v523_v43  ;;  %v525_v42 = vld [vmem:[#allocation7 + $0x4e8] sm:$0xff]  ;;  %v526_v43 = vld [vmem:[#allocation7 + $0x4f0] sm:$0xff] }
 0x31c   :  { %929 = vmatpush.msra.mxu2 %v510_v58  ;;  %949 = vmatpush.msra.mxu3 %v511_v44  ;;  %v527_v58 = vld [vmem:[#allocation7 + $0x4f8] sm:$0xff]  ;;  %v514_v44 = vld [vmem:[#allocation7 + $0x490] sm:$0xff] }
 0x31d   :  { %969 = vmatpush.msra.mxu0 %v512_v55  ;;  %989 = vmatpush.msra.mxu1 %v513_v45  ;;  %v515_v55 = vld [vmem:[#allocation7 + $0x498] sm:$0xff]  ;;  %v516_v45 = vld [vmem:[#allocation7 + $0x4a0] sm:$0xff] }
 0x31e   :  { %930 = vmatpush.msra.mxu2 %v500_v46  ;;  %950 = vmatpush.msra.mxu3 %v501_v47  ;;  %v517_v46 = vld [vmem:[#allocation7 + $0x4a8] sm:$0xff]  ;;  %v504_v47 = vld [vmem:[#allocation7 + $0x440] sm:$0xff] }
 0x31f   :  { %970 = vmatpush.msra.mxu0 %v502_v48  ;;  %990 = vmatpush.msra.mxu1 %v503_v37  ;;  %v505_v48 = vld [vmem:[#allocation7 + $0x448] sm:$0xff]  ;;  %v506_v37 = vld [vmem:[#allocation7 + $0x450] sm:$0xff] }
 0x320   :  { %931 = vmatpush.msra.mxu2 %v490_v49  ;;  %951 = vmatpush.msra.mxu3 %v491_v50  ;;  %v507_v49 = vld [vmem:[#allocation7 + $0x458] sm:$0xff]  ;;  %v494_v50 = vld [vmem:[#allocation7 + $0x3f0] sm:$0xff] }
 0x321   :  { %971 = vmatpush.msra.mxu0 %v492_v51  ;;  %991 = vmatpush.msra.mxu1 %v493_v52  ;;  %v495_v51 = vld [vmem:[#allocation7 + $0x3f8] sm:$0xff]  ;;  %v496_v52 = vld [vmem:[#allocation7 + $0x400] sm:$0xff] }
 0x322   :  { %932 = vmatpush.msra.mxu2 %v480_v53  ;;  %952 = vmatpush.msra.mxu3 %v481_v54  ;;  %v497_v53 = vld [vmem:[#allocation7 + $0x408] sm:$0xff]  ;;  %v484_v54 = vld [vmem:[#allocation7 + $0x3a0] sm:$0xff] }
 0x323   :  { %972 = vmatpush.msra.mxu0 %v482_v56  ;;  %992 = vmatpush.msra.mxu1 %v483_v57  ;;  %v485_v56 = vld [vmem:[#allocation7 + $0x3a8] sm:$0xff]  ;;  %v486_v57 = vld [vmem:[#allocation7 + $0x3b0] sm:$0xff] }
 0x324   :  { %933 = vmatpush.msra.mxu2 %v470_v59  ;;  %953 = vmatpush.msra.mxu3 %v471_v60  ;;  %v487_v59 = vld [vmem:[#allocation7 + $0x3b8] sm:$0xff]  ;;  %v474_v60 = vld [vmem:[#allocation7 + $0x350] sm:$0xff] }
 0x325   :  { %973 = vmatpush.msra.mxu0 %v472_v61  ;;  %993 = vmatpush.msra.mxu1 %v473_v62  ;;  %v475_v61 = vld [vmem:[#allocation7 + $0x358] sm:$0xff]  ;;  %v476_v62 = vld [vmem:[#allocation7 + $0x360] sm:$0xff] }
 0x326   :  { %934 = vmatpush.msra.mxu2 %v460_v63  ;;  %954 = vmatpush.msra.mxu3 %v461_v0  ;;  %v477_v63 = vld [vmem:[#allocation7 + $0x368] sm:$0xff]  ;;  %v464_v0 = vld [vmem:[#allocation7 + $0x300] sm:$0xff] }
 0x327   :  { %974 = vmatpush.msra.mxu0 %v462_v1  ;;  %994 = vmatpush.msra.mxu1 %v463_v2  ;;  %v465_v1 = vld [vmem:[#allocation7 + $0x308] sm:$0xff]  ;;  %v466_v2 = vld [vmem:[#allocation7 + $0x310] sm:$0xff] }
 0x328   :  { %935 = vmatpush.msra.mxu2 %v450_v3  ;;  %955 = vmatpush.msra.mxu3 %v451_v4  ;;  %v467_v3 = vld [vmem:[#allocation7 + $0x318] sm:$0xff]  ;;  %v454_v4 = vld [vmem:[#allocation7 + $0x2b0] sm:$0xff] }
 0x329   :  { %975 = vmatpush.msra.mxu0 %v452_v5  ;;  %995 = vmatpush.msra.mxu1 %v453_v6  ;;  %v455_v5 = vld [vmem:[#allocation7 + $0x2b8] sm:$0xff]  ;;  %v456_v6 = vld [vmem:[#allocation7 + $0x2c0] sm:$0xff] }
 0x32a   :  { %936 = vmatpush.msra.mxu2 %v440_v7  ;;  %956 = vmatpush.msra.mxu3 %v441_v8  ;;  %v457_v7 = vld [vmem:[#allocation7 + $0x2c8] sm:$0xff]  ;;  %v444_v8 = vld [vmem:[#allocation7 + $0x260] sm:$0xff] }
 0x32b   :  { %976 = vmatpush.msra.mxu0 %v442_v9  ;;  %996 = vmatpush.msra.mxu1 %v443_v10  ;;  %v445_v9 = vld [vmem:[#allocation7 + $0x268] sm:$0xff]  ;;  %v446_v10 = vld [vmem:[#allocation7 + $0x270] sm:$0xff] }
 0x32c   :  { %937 = vmatpush.msra.mxu2 %v430_v11  ;;  %957 = vmatpush.msra.mxu3 %v431_v12  ;;  %v447_v11 = vld [vmem:[#allocation7 + $0x278] sm:$0xff]  ;;  %v434_v12 = vld [vmem:[#allocation7 + $0x210] sm:$0xff] }
 0x32d   :  { %977 = vmatpush.msra.mxu0 %v432_v13  ;;  %997 = vmatpush.msra.mxu1 %v433_v14  ;;  %v435_v13 = vld [vmem:[#allocation7 + $0x218] sm:$0xff]  ;;  %v436_v14 = vld [vmem:[#allocation7 + $0x220] sm:$0xff] }
 0x32e   :  { %938 = vmatpush.msra.mxu2 %v420_v16  ;;  %958 = vmatpush.msra.mxu3 %v421_v17  ;;  %v437_v16 = vld [vmem:[#allocation7 + $0x228] sm:$0xff]  ;;  %v424_v17 = vld [vmem:[#allocation7 + $0x1c0] sm:$0xff] }
 0x32f   :  { %978 = vmatpush.msra.mxu0 %v422_v18  ;;  %998 = vmatpush.msra.mxu1 %v423_v20  ;;  %v425_v18 = vld [vmem:[#allocation7 + $0x1c8] sm:$0xff]  ;;  %v426_v20 = vld [vmem:[#allocation7 + $0x1d0] sm:$0xff] }
 0x330   :  { %939 = vmatpush.msra.mxu2 %v410_v21  ;;  %959 = vmatpush.msra.mxu3 %v411_v15  ;;  %v427_v21 = vld [vmem:[#allocation7 + $0x1d8] sm:$0xff]  ;;  %v414_v15 = vld [vmem:[#allocation7 + $0x170] sm:$0xff] }
 0x331   :  { %979 = vmatpush.msra.mxu0 %v412_v22  ;;  %999 = vmatpush.msra.mxu1 %v413_v23  ;;  %v415_v22 = vld [vmem:[#allocation7 + $0x178] sm:$0xff]  ;;  %v416_v23 = vld [vmem:[#allocation7 + $0x180] sm:$0xff] }
 0x332   :  { %940 = vmatpush.msra.mxu2 %v400_v24  ;;  %960 = vmatpush.msra.mxu3 %v401_v25  ;;  %v417_v24 = vld [vmem:[#allocation7 + $0x188] sm:$0xff]  ;;  %v404_v25 = vld [vmem:[#allocation7 + $0x120] sm:$0xff] }
 0x333   :  { %980 = vmatpush.msra.mxu0 %v402_v26  ;;  %1000 = vmatpush.msra.mxu1 %v403_v27  ;;  %v405_v26 = vld [vmem:[#allocation7 + $0x128] sm:$0xff]  ;;  %v406_v27 = vld [vmem:[#allocation7 + $0x130] sm:$0xff] }
 0x334   :  { %941 = vmatpush.msra.mxu2 %v390_v28  ;;  %961 = vmatpush.msra.mxu3 %v391_v29  ;;  %v407_v28 = vld [vmem:[#allocation7 + $0x138] sm:$0xff]  ;;  %v394_v29 = vld [vmem:[#allocation7 + $0xd0] sm:$0xff] }
 0x335   :  { %981 = vmatpush.msra.mxu0 %v392_v30  ;;  %1001 = vmatpush.msra.mxu1 %v393_v31  ;;  %v395_v30 = vld [vmem:[#allocation7 + $0xd8] sm:$0xff]  ;;  %v396_v31 = vld [vmem:[#allocation7 + $0xe0] sm:$0xff] }
 0x336   :  { %942 = vmatpush.msra.mxu2 %v380_v32  ;;  %962 = vmatpush.msra.mxu3 %v381_v33  ;;  %v397_v32 = vld [vmem:[#allocation7 + $0xe8] sm:$0xff]  ;;  %v384_v33 = vld [vmem:[#allocation7 + $0x80] sm:$0xff] }
 0x337   :  { %982 = vmatpush.msra.mxu0 %v382_v34  ;;  %1002 = vmatpush.msra.mxu1 %v383_v35  ;;  %v385_v34 = vld [vmem:[#allocation7 + $0x88] sm:$0xff]  ;;  %v386_v35 = vld [vmem:[#allocation7 + $0x90] sm:$0xff] }
 0x338   :  { %943 = vmatpush.msra.mxu2 %v370_v36  ;;  %963 = vmatpush.msra.mxu3 %v371_v19  ;;  %v387_v36 = vld [vmem:[#allocation7 + $0x98] sm:$0xff]  ;;  %v374_v19 = vld [vmem:[#allocation7 + $0x30] sm:$0xff] }
 0x339   :  { %983 = vmatpush.msra.mxu0 %v372_v38  ;;  %1003 = vmatpush.msra.mxu1 %v373_v40  ;;  %v375_v38 = vld [vmem:[#allocation7 + $0x38] sm:$0xff]  ;;  %v376_v40 = vld [vmem:[#allocation7 + $0x40] sm:$0xff] }
 0x33a   :  { %944 = vmatmul.f32.vlgmr.msra.gmra.mxu2 %v2016_v39  ;;  %964 = vmatmul.f32.vlgmr.msra.gmra.mxu3 %v2016_v39 }
 0x33b   :  { %984 = vmatmul.f32.vlgmr.msra.gmra.mxu0 %v2016_v39  ;;  %1004 = vmatmul.f32.vlgmr.msra.gmra.mxu1 %v2016_v39 }
 0x33c   :  { %1008 = vmatpush.msrb.mxu2 %v524_v41  ;;  %1028 = vmatpush.msrb.mxu3 %v525_v42  ;;  %v377_v41 = vld [vmem:[#allocation7 + $0x48] sm:$0xff]  ;;  %v1147_v42 = vld [vmem:[#allocation10 + $0x78] sm:$0xff] }
 0x33d   :  { %1048 = vmatpush.msrb.mxu0 %v526_v43  ;;  %1068 = vmatpush.msrb.mxu1 %v527_v58  ;;  %v1163_v43 = vld [vmem:[#allocation10 + $0xf8] sm:$0xff]  ;;  %v1146_v58 = vld [vmem:[#allocation10 + $0x70] sm:$0xff] }
 0x33e   :  { %1009 = vmatpush.msrb.mxu2 %v514_v44  ;;  %1029 = vmatpush.msrb.mxu3 %v515_v55  ;;  %v1162_v44 = vld [vmem:[#allocation10 + $0xf0] sm:$0xff]  ;;  %v1145_v55 = vld [vmem:[#allocation10 + $0x68] sm:$0xff] }
 0x33f   :  { %1049 = vmatpush.msrb.mxu0 %v516_v45  ;;  %1069 = vmatpush.msrb.mxu1 %v517_v46  ;;  %v1161_v45 = vld [vmem:[#allocation10 + $0xe8] sm:$0xff]  ;;  %v1144_v46 = vld [vmem:[#allocation10 + $0x60] sm:$0xff] }
 0x340   :  { %1010 = vmatpush.msrb.mxu2 %v504_v47  ;;  %1030 = vmatpush.msrb.mxu3 %v505_v48  ;;  %v1160_v47 = vld [vmem:[#allocation10 + $0xe0] sm:$0xff]  ;;  %v1143_v48 = vld [vmem:[#allocation10 + $0x58] sm:$0xff] }
 0x341   :  { %1050 = vmatpush.msrb.mxu0 %v506_v37  ;;  %1070 = vmatpush.msrb.mxu1 %v507_v49  ;;  %v1159_v37 = vld [vmem:[#allocation10 + $0xd8] sm:$0xff]  ;;  %v1142_v49 = vld [vmem:[#allocation10 + $0x50] sm:$0xff] }
 0x342   :  { %1011 = vmatpush.msrb.mxu2 %v494_v50  ;;  %1031 = vmatpush.msrb.mxu3 %v495_v51  ;;  %v1158_v50 = vld [vmem:[#allocation10 + $0xd0] sm:$0xff]  ;;  %v1157_v51 = vld [vmem:[#allocation10 + $0xc8] sm:$0xff] }
 0x343   :  { %1051 = vmatpush.msrb.mxu0 %v496_v52  ;;  %1071 = vmatpush.msrb.mxu1 %v497_v53  ;;  %v1140_v52 = vld [vmem:[#allocation10 + $0x40] sm:$0xff] }
 0x344   :  { %1012 = vmatpush.msrb.mxu2 %v484_v54  ;;  %1032 = vmatpush.msrb.mxu3 %v485_v56  ;;  %v1156_v53 = vld [vmem:[#allocation10 + $0xc0] sm:$0xff]  ;;  %v1139_v54 = vld [vmem:[#allocation10 + $0x38] sm:$0xff] }
 0x345   :  { %1052 = vmatpush.msrb.mxu0 %v486_v57  ;;  %1072 = vmatpush.msrb.mxu1 %v487_v59  ;;  %v1155_v56 = vld [vmem:[#allocation10 + $0xb8] sm:$0xff]  ;;  %v1138_v57 = vld [vmem:[#allocation10 + $0x30] sm:$0xff] }
 0x346   :  { %1013 = vmatpush.msrb.mxu2 %v474_v60  ;;  %1033 = vmatpush.msrb.mxu3 %v475_v61  ;;  %v1154_v59 = vld [vmem:[#allocation10 + $0xb0] sm:$0xff]  ;;  %v1137_v60 = vld [vmem:[#allocation10 + $0x28] sm:$0xff] }
 0x347   :  { %1053 = vmatpush.msrb.mxu0 %v476_v62  ;;  %1073 = vmatpush.msrb.mxu1 %v477_v63  ;;  %v1153_v61 = vld [vmem:[#allocation10 + $0xa8] sm:$0xff]  ;;  %v1136_v62 = vld [vmem:[#allocation10 + $0x20] sm:$0xff] }
 0x348   :  { %1014 = vmatpush.msrb.mxu2 %v464_v0  ;;  %1034 = vmatpush.msrb.mxu3 %v465_v1  ;;  %v1152_v63 = vld [vmem:[#allocation10 + $0xa0] sm:$0xff]  ;;  %v1135_v0 = vld [vmem:[#allocation10 + $0x18] sm:$0xff] }
 0x349   :  { %1054 = vmatpush.msrb.mxu0 %v466_v2  ;;  %1074 = vmatpush.msrb.mxu1 %v467_v3  ;;  %v1151_v1 = vld [vmem:[#allocation10 + $0x98] sm:$0xff]  ;;  %v1134_v2 = vld [vmem:[#allocation10 + $0x10] sm:$0xff] }
 0x34a   :  { %1015 = vmatpush.msrb.mxu2 %v454_v4  ;;  %1035 = vmatpush.msrb.mxu3 %v455_v5  ;;  %v1150_v3 = vld [vmem:[#allocation10 + $0x90] sm:$0xff]  ;;  %v1133_v4 = vld [vmem:[#allocation10 + $0x8] sm:$0xff] }
 0x34b   :  { %1055 = vmatpush.msrb.mxu0 %v456_v6  ;;  %1075 = vmatpush.msrb.mxu1 %v457_v7  ;;  %v1149_v5 = vld [vmem:[#allocation10 + $0x88] sm:$0xff]  ;;  %v1132_v6 = vld [vmem:[#allocation10] sm:$0xff] }
 0x34c   :  { %1016 = vmatpush.msrb.mxu2 %v444_v8  ;;  %1036 = vmatpush.msrb.mxu3 %v445_v9  ;;  %v1148_v7 = vld [vmem:[#allocation10 + $0x80] sm:$0xff]  ;;  %v1179_v8 = vld [vmem:[#allocation10 + $0x178] sm:$0xff] }
 0x34d   :  { %1056 = vmatpush.msrb.mxu0 %v446_v10  ;;  %1076 = vmatpush.msrb.mxu1 %v447_v11  ;;  %v1211_v9 = vld [vmem:[#allocation10 + $0x278] sm:$0xff] }
 0x34e   :  { %1017 = vmatpush.msrb.mxu2 %v434_v12  ;;  %1037 = vmatpush.msrb.mxu3 %v435_v13  ;;  %v1227_v10 = vld [vmem:[#allocation10 + $0x2f8] sm:$0xff]  ;;  %v1178_v12 = vld [vmem:[#allocation10 + $0x170] sm:$0xff] }
 0x34f   :  { %1057 = vmatpush.msrb.mxu0 %v436_v14  ;;  %1077 = vmatpush.msrb.mxu1 %v437_v16  ;;  %v1195_v11 = vld [vmem:[#allocation10 + $0x1f8] sm:$0xff]  ;;  %v1194_v13 = vld [vmem:[#allocation10 + $0x1f0] sm:$0xff] }
 0x350   :  { %1018 = vmatpush.msrb.mxu2 %v424_v17  ;;  %1038 = vmatpush.msrb.mxu3 %v425_v18  ;;  %v1210_v14 = vld [vmem:[#allocation10 + $0x270] sm:$0xff]  ;;  %v1177_v17 = vld [vmem:[#allocation10 + $0x168] sm:$0xff] }
 0x351   :  { %1058 = vmatpush.msrb.mxu0 %v426_v20  ;;  %1078 = vmatpush.msrb.mxu1 %v427_v21  ;;  %v1226_v16 = vld [vmem:[#allocation10 + $0x2f0] sm:$0xff]  ;;  %v1193_v18 = vld [vmem:[#allocation10 + $0x1e8] sm:$0xff] }
 0x352   :  { %1019 = vmatpush.msrb.mxu2 %v414_v15  ;;  %1039 = vmatpush.msrb.mxu3 %v415_v22  ;;  %v1209_v15 = vld [vmem:[#allocation10 + $0x268] sm:$0xff] }
 0x353   :  { %1059 = vmatpush.msrb.mxu0 %v416_v23  ;;  %1079 = vmatpush.msrb.mxu1 %v417_v24  ;;  %v1225_v22 = vld [vmem:[#allocation10 + $0x2e8] sm:$0xff]  ;;  %v1176_v23 = vld [vmem:[#allocation10 + $0x160] sm:$0xff] }
 0x354   :  { %1020 = vmatpush.msrb.mxu2 %v404_v25  ;;  %1040 = vmatpush.msrb.mxu3 %v405_v26  ;;  %v1192_v24 = vld [vmem:[#allocation10 + $0x1e0] sm:$0xff] }
 0x355   :  { %1060 = vmatpush.msrb.mxu0 %v406_v27  ;;  %1080 = vmatpush.msrb.mxu1 %v407_v28  ;;  %v1208_v25 = vld [vmem:[#allocation10 + $0x260] sm:$0xff]  ;;  %v1175_v27 = vld [vmem:[#allocation10 + $0x158] sm:$0xff] }
 0x356   :  { %1021 = vmatpush.msrb.mxu2 %v394_v29  ;;  %1041 = vmatpush.msrb.mxu3 %v395_v30  ;;  %v1224_v26 = vld [vmem:[#allocation10 + $0x2e0] sm:$0xff]  ;;  %v1191_v28 = vld [vmem:[#allocation10 + $0x1d8] sm:$0xff] }
 0x357   :  { %1061 = vmatpush.msrb.mxu0 %v396_v31  ;;  %1081 = vmatpush.msrb.mxu1 %v397_v32  ;;  %v1207_v29 = vld [vmem:[#allocation10 + $0x258] sm:$0xff]  ;;  %v1174_v31 = vld [vmem:[#allocation10 + $0x150] sm:$0xff] }
 0x358   :  { %1022 = vmatpush.msrb.mxu2 %v384_v33  ;;  %1042 = vmatpush.msrb.mxu3 %v385_v34  ;;  %v1223_v30 = vld [vmem:[#allocation10 + $0x2d8] sm:$0xff]  ;;  %v1190_v32 = vld [vmem:[#allocation10 + $0x1d0] sm:$0xff] }
 0x359   :  { %1062 = vmatpush.msrb.mxu0 %v386_v35  ;;  %1082 = vmatpush.msrb.mxu1 %v387_v36  ;;  %v1206_v33 = vld [vmem:[#allocation10 + $0x250] sm:$0xff]  ;;  %v1173_v35 = vld [vmem:[#allocation10 + $0x148] sm:$0xff] }
 0x35a   :  { %1023 = vmatpush.msrb.mxu2 %v374_v19  ;;  %1043 = vmatpush.msrb.mxu3 %v375_v38  ;;  %v1222_v34 = vld [vmem:[#allocation10 + $0x2d0] sm:$0xff]  ;;  %v1189_v36 = vld [vmem:[#allocation10 + $0x1c8] sm:$0xff] }
 0x35b   :  { %1063 = vmatpush.msrb.mxu0 %v376_v40  ;;  %1083 = vmatpush.msrb.mxu1 %v377_v41  ;;  %v1205_v19 = vld [vmem:[#allocation10 + $0x248] sm:$0xff]  ;;  %v1172_v40 = vld [vmem:[#allocation10 + $0x140] sm:$0xff] }
 0x35c   :  { %1024 = vmatmul.f32.vlgmr.msrb.gmra.mxu2 %v2016_v39  ;;  %1044 = vmatmul.f32.vlgmr.msrb.gmra.mxu3 %v2016_v39  ;;  %v1221_v38 = vld [vmem:[#allocation10 + $0x2c8] sm:$0xff]  ;;  %v1188_v41 = vld [vmem:[#allocation10 + $0x1c0] sm:$0xff] }
 0x35d   :  { %1064 = vmatmul.f32.vlgmr.msrb.gmra.mxu0 %v2016_v39  ;;  %1084 = vmatmul.f32.vlgmr.msrb.gmra.mxu1 %v2016_v39  ;;  %v1141_v39 = vld [vmem:[#allocation10 + $0x48] sm:$0xff] }
 0x35e   :  { %1296 = vmatpush.msra.mxu2 %v1147_v42  ;;  %1316 = vmatpush.msra.mxu3 %v1163_v43 }
 0x35f   :  { %1336 = vmatpush.msra.mxu0 %v1179_v8  ;;  %1356 = vmatpush.msra.mxu1 %v1195_v11  ;;  %v1185_v8 = vld [vmem:[#allocation10 + $0x1a8] sm:$0xff]  ;;  %v1168_v11 = vld [vmem:[#allocation10 + $0x120] sm:$0xff] }
 0x360   :  { %1297 = vmatpush.msra.mxu2 %v1146_v58  ;;  %1317 = vmatpush.msra.mxu3 %v1162_v44  ;;  %v1204_v58 = vld [vmem:[#allocation10 + $0x240] sm:$0xff] }
 0x361   :  { %1337 = vmatpush.msra.mxu0 %v1178_v12  ;;  %1357 = vmatpush.msra.mxu1 %v1194_v13  ;;  %v1220_v44 = vld [vmem:[#allocation10 + $0x2c0] sm:$0xff]  ;;  %v1197_v13 = vld [vmem:[#allocation10 + $0x208] sm:$0xff] }
 0x362   :  { %1298 = vmatpush.msra.mxu2 %v1145_v55  ;;  %1318 = vmatpush.msra.mxu3 %v1161_v45  ;;  %v1171_v55 = vld [vmem:[#allocation10 + $0x138] sm:$0xff]  ;;  %v1184_v12 = vld [vmem:[#allocation10 + $0x1a0] sm:$0xff] }
 0x363   :  { %1338 = vmatpush.msra.mxu0 %v1177_v17  ;;  %1358 = vmatpush.msra.mxu1 %v1193_v18  ;;  %v1187_v45 = vld [vmem:[#allocation10 + $0x1b8] sm:$0xff]  ;;  %v1196_v18 = vld [vmem:[#allocation10 + $0x200] sm:$0xff] }
 0x364   :  { %1299 = vmatpush.msra.mxu2 %v1144_v46  ;;  %1319 = vmatpush.msra.mxu3 %v1160_v47  ;;  %v1203_v46 = vld [vmem:[#allocation10 + $0x238] sm:$0xff] }
 0x365   :  { %1339 = vmatpush.msra.mxu0 %v1176_v23  ;;  %1359 = vmatpush.msra.mxu1 %v1192_v24  ;;  %v1219_v47 = vld [vmem:[#allocation10 + $0x2b8] sm:$0xff]  ;;  %v1166_v24 = vld [vmem:[#allocation10 + $0x110] sm:$0xff] }
 0x366   :  { %1300 = vmatpush.msra.mxu2 %v1143_v48  ;;  %1320 = vmatpush.msra.mxu3 %v1159_v37  ;;  %v2041_v48 = vld [vmem:[%s2130_s12] sm:$0xff]  ;;  %v1183_v17 = vld [vmem:[#allocation10 + $0x198] sm:$0xff] }
 0x367   :  { %1340 = vmatpush.msra.mxu0 %v1175_v27  ;;  %1360 = vmatpush.msra.mxu1 %v1191_v28  ;;  %v1202_v37 = vld [vmem:[#allocation10 + $0x230] sm:$0xff]  ;;  %v1291_v23 = vld [vmem:[#allocation10 + $0x4f8] sm:$0xff]  ;;  %v1165_v28 = vld [vmem:[#allocation10 + $0x108] sm:$0xff] }
 0x368   :  { %1301 = vmatpush.msra.mxu2 %v1142_v49  ;;  %1321 = vmatpush.msra.mxu3 %v1158_v50  ;;  %v1218_v49 = vld [vmem:[#allocation10 + $0x2b0] sm:$0xff]  ;;  %v1201_v50 = vld [vmem:[#allocation10 + $0x228] sm:$0xff] }
 0x369   :  { %1341 = vmatpush.msra.mxu0 %v1174_v31  ;;  %1361 = vmatpush.msra.mxu1 %v1190_v32  ;;  %v1290_v27 = vld [vmem:[#allocation10 + $0x4f0] sm:$0xff]  ;;  %v1289_v31 = vld [vmem:[#allocation10 + $0x4e8] sm:$0xff]  ;;  %v1164_v32 = vld [vmem:[#allocation10 + $0x100] sm:$0xff] }
 0x36a   :  { %1302 = vmatpush.msra.mxu2 %v1141_v39  ;;  %1322 = vmatpush.msra.mxu3 %v1157_v51  ;;  %v1217_v39 = vld [vmem:[#allocation10 + $0x2a8] sm:$0xff] }
 0x36b   :  { %1342 = vmatpush.msra.mxu0 %v1173_v35  ;;  %1362 = vmatpush.msra.mxu1 %v1189_v36  ;;  %v1259_v35 = vld [vmem:[#allocation10 + $0x3f8] sm:$0xff]  ;;  %v1272_v36 = vld [vmem:[#allocation10 + $0x460] sm:$0xff] }
 0x36c   :  { %1303 = vmatpush.msra.mxu2 %v1140_v52  ;;  %1323 = vmatpush.msra.mxu3 %v1156_v53  ;;  %v1092_v53 = vperm.slane %v2041_v48, 0 }
 0x36d   :  { %1343 = vmatpush.msra.mxu0 %v1172_v40  ;;  %1363 = vmatpush.msra.mxu1 %v1188_v41  ;;  %v1258_v40 = vld [vmem:[#allocation10 + $0x3f0] sm:$0xff]  ;;  %v1271_v41 = vld [vmem:[#allocation10 + $0x458] sm:$0xff] }
 0x36e   :  { %1304 = vmatpush.msra.mxu2 %v1139_v54  ;;  %1324 = vmatpush.msra.mxu3 %v1155_v56  ;;  %v1093_v54 = vperm.slane %v2041_v48, 1 }
 0x36f   :  { %1344 = vmatpush.msra.mxu0 %v1171_v55  ;;  %1364 = vmatpush.msra.mxu1 %v1187_v45  ;;  %v1257_v55 = vld [vmem:[#allocation10 + $0x3e8] sm:$0xff]  ;;  %v1270_v45 = vld [vmem:[#allocation10 + $0x450] sm:$0xff] }
 0x370   :  { %1305 = vmatpush.msra.mxu2 %v1138_v57  ;;  %1325 = vmatpush.msra.mxu3 %v1154_v59  ;;  %v1200_v59 = vld [vmem:[#allocation10 + $0x220] sm:$0xff] }
 0x372   :  { %1306 = vmatpush.msra.mxu2 %v1137_v60  ;;  %1326 = vmatpush.msra.mxu3 %v1153_v61  ;;  %v2030_v20 = vpop.f32.mrf.mxu0  ;;  %v2032_v21 = vpop.f32.mrf.mxu1  ;;  %v1216_v60 = vld [vmem:[#allocation10 + $0x2a0] sm:$0xff] }
 0x374   :  { %1307 = vmatpush.msra.mxu2 %v1136_v62  ;;  %1327 = vmatpush.msra.mxu3 %v1152_v63 }
 0x376   :  { %1308 = vmatpush.msra.mxu2 %v1135_v0  ;;  %1328 = vmatpush.msra.mxu3 %v1151_v1  ;;  %v1170_v1 = vld [vmem:[#allocation10 + $0x130] sm:$0xff] }
 0x377   :  { %v705_v51 = vpop.f32.mrf.mxu2  ;;  %v725_v52 = vpop.f32.mrf.mxu3  ;;  %1345 = vmatpush.msra.mxu0 %v1170_v1  ;;  %v1282_v1 = vld [vmem:[#allocation10 + $0x4b0] sm:$0xff] }
 0x378   :  { %1309 = vmatpush.msra.mxu2 %v1134_v2  ;;  %1329 = vmatpush.msra.mxu3 %v1150_v3  ;;  %v1186_v2 = vld [vmem:[#allocation10 + $0x1b0] sm:$0xff]  ;;  %v1199_v3 = vld [vmem:[#allocation10 + $0x218] sm:$0xff] }
 0x379   :  { %1365 = vmatpush.msra.mxu1 %v1186_v2 }
 0x37a   :  { %1310 = vmatpush.msra.mxu2 %v1133_v4  ;;  %1330 = vmatpush.msra.mxu3 %v1149_v5 }
 0x37b   :  { %1366 = vmatpush.msra.mxu1 %v1185_v8  ;;  %v1096_v8 = vperm.slane %v2041_v48, 4 }
 0x37c   :  { %1311 = vmatpush.msra.mxu2 %v1132_v6  ;;  %1331 = vmatpush.msra.mxu3 %v1148_v7  ;;  %v2034_v42 = vpop.f32.mrf.mxu0  ;;  %v2036_v43 = vpop.f32.mrf.mxu1  ;;  %v1215_v6 = vld [vmem:[#allocation10 + $0x298] sm:$0xff]  ;;  %v1169_v7 = vld [vmem:[#allocation10 + $0x128] sm:$0xff] }
 0x37d   :  { %1346 = vmatpush.msra.mxu0 %v1169_v7  ;;  %1367 = vmatpush.msra.mxu1 %v1184_v12  ;;  %v1281_v7 = vld [vmem:[#allocation10 + $0x4a8] sm:$0xff] }
 0x37e   :  { %1376 = vmatpush.msrb.mxu2 %v1211_v9  ;;  %1396 = vmatpush.msrb.mxu3 %v1227_v10  ;;  %v1198_v9 = vld [vmem:[#allocation10 + $0x210] sm:$0xff] }
 0x37f   :  { %v1214_v10 = vld [vmem:[#allocation10 + $0x290] sm:$0xff]  ;;  %1347 = vmatpush.msra.mxu0 %v1168_v11  ;;  %1368 = vmatpush.msra.mxu1 %v1183_v17  ;;  %v1251_v11 = vld [vmem:[#allocation10 + $0x3b8] sm:$0xff] }
 0x380   :  { %1377 = vmatpush.msrb.mxu2 %v1210_v14  ;;  %1397 = vmatpush.msrb.mxu3 %v1226_v16  ;;  %v1213_v14 = vld [vmem:[#allocation10 + $0x288] sm:$0xff]  ;;  %v1167_v16 = vld [vmem:[#allocation10 + $0x118] sm:$0xff] }
 0x381   :  { %1348 = vmatpush.msra.mxu0 %v1167_v16  ;;  %v1280_v16 = vld [vmem:[#allocation10 + $0x4a0] sm:$0xff] }
 0x382   :  { %1378 = vmatpush.msrb.mxu2 %v1209_v15  ;;  %1398 = vmatpush.msrb.mxu3 %v1225_v22  ;;  %v1212_v15 = vld [vmem:[#allocation10 + $0x280] sm:$0xff]  ;;  %v1275_v22 = vld [vmem:[#allocation10 + $0x478] sm:$0xff] }
 0x383   :  { %1349 = vmatpush.msra.mxu0 %v1166_v24  ;;  %v1279_v24 = vld [vmem:[#allocation10 + $0x498] sm:$0xff] }
 0x384   :  { %1379 = vmatpush.msrb.mxu2 %v1208_v25  ;;  %1399 = vmatpush.msrb.mxu3 %v1224_v26  ;;  %v1182_v25 = vld [vmem:[#allocation10 + $0x190] sm:$0xff] }
 0x385   :  { %v1274_v26 = vld [vmem:[#allocation10 + $0x470] sm:$0xff]  ;;  %1369 = vmatpush.msra.mxu1 %v1182_v25  ;;  %1350 = vmatpush.msra.mxu0 %v1165_v28  ;;  %v1249_v28 = vld [vmem:[#allocation10 + $0x3a8] sm:$0xff] }
 0x386   :  { %1380 = vmatpush.msrb.mxu2 %v1207_v29  ;;  %1400 = vmatpush.msrb.mxu3 %v1223_v30  ;;  %v1181_v29 = vld [vmem:[#allocation10 + $0x188] sm:$0xff] }
 0x387   :  { %v1273_v30 = vld [vmem:[#allocation10 + $0x468] sm:$0xff]  ;;  %1370 = vmatpush.msra.mxu1 %v1181_v29  ;;  %1351 = vmatpush.msra.mxu0 %v1164_v32  ;;  %v1094_v29 = vperm.slane %v2041_v48, 2 }
 0x388   :  { %1381 = vmatpush.msrb.mxu2 %v1206_v33  ;;  %1401 = vmatpush.msrb.mxu3 %v1222_v34  ;;  %v1180_v33 = vld [vmem:[#allocation10 + $0x180] sm:$0xff]  ;;  %v1243_v34 = vld [vmem:[#allocation10 + $0x378] sm:$0xff] }
 0x389   :  { %1371 = vmatpush.msra.mxu1 %v1180_v33  ;;  %1416 = vmatpush.msrb.mxu0 %v1243_v34 }
 0x38a   :  { %1382 = vmatpush.msrb.mxu2 %v1205_v19  ;;  %1402 = vmatpush.msrb.mxu3 %v1221_v38  ;;  %v1288_v19 = vld [vmem:[#allocation10 + $0x4e0] sm:$0xff]  ;;  %v1242_v38 = vld [vmem:[#allocation10 + $0x370] sm:$0xff] }
 0x38b   :  { %1436 = vmatpush.msrb.mxu1 %v1259_v35  ;;  %1417 = vmatpush.msrb.mxu0 %v1242_v38  ;;  %v1262_v35 = vld [vmem:[#allocation10 + $0x410] sm:$0xff] }
 0x38c   :  { %1383 = vmatpush.msrb.mxu2 %v1204_v58  ;;  %1403 = vmatpush.msrb.mxu3 %v1220_v44  ;;  %v1287_v58 = vld [vmem:[#allocation10 + $0x4d8] sm:$0xff]  ;;  %v1241_v44 = vld [vmem:[#allocation10 + $0x368] sm:$0xff] }
 0x38d   :  { %1437 = vmatpush.msrb.mxu1 %v1258_v40  ;;  %1418 = vmatpush.msrb.mxu0 %v1241_v44  ;;  %v1232_v40 = vld [vmem:[#allocation10 + $0x320] sm:$0xff]  ;;  %v1277_v44 = vld [vmem:[#allocation10 + $0x488] sm:$0xff] }
 0x38e   :  { %1384 = vmatpush.msrb.mxu2 %v1203_v46  ;;  %1404 = vmatpush.msrb.mxu3 %v1219_v47  ;;  %v1286_v46 = vld [vmem:[#allocation10 + $0x4d0] sm:$0xff]  ;;  %v785_v47 = vpop.f32.mrf.mxu2 }
 0x38f   :  { %1438 = vmatpush.msrb.mxu1 %v1257_v55 }
 0x390   :  { %1385 = vmatpush.msrb.mxu2 %v1202_v37  ;;  %1405 = vmatpush.msrb.mxu3 %v1218_v49  ;;  %v805_v37 = vpop.f32.mrf.mxu3  ;;  %v1240_v49 = vld [vmem:[#allocation10 + $0x360] sm:$0xff] }
 0x391   :  { %1419 = vmatpush.msrb.mxu0 %v1240_v49  ;;  %v1276_v49 = vld [vmem:[#allocation10 + $0x480] sm:$0xff] }
 0x392   :  { %1386 = vmatpush.msrb.mxu2 %v1201_v50  ;;  %1406 = vmatpush.msrb.mxu3 %v1217_v39  ;;  %v1256_v50 = vld [vmem:[#allocation10 + $0x3e0] sm:$0xff]  ;;  %v1269_v39 = vld [vmem:[#allocation10 + $0x448] sm:$0xff] }
 0x393   :  { %1439 = vmatpush.msrb.mxu1 %v1256_v50  ;;  %v1230_v50 = vld [vmem:[#allocation10 + $0x310] sm:$0xff] }
 0x394   :  { %1387 = vmatpush.msrb.mxu2 %v1200_v59  ;;  %1407 = vmatpush.msrb.mxu3 %v1216_v60  ;;  %v1254_v59 = vld [vmem:[#allocation10 + $0x3d0] sm:$0xff]  ;;  %v1267_v60 = vld [vmem:[#allocation10 + $0x438] sm:$0xff] }
 0x396   :  { %v905_v56 = vpop.f32.mrf.mxu0  ;;  %v925_v57 = vpop.f32.mrf.mxu1  ;;  %1388 = vmatpush.msrb.mxu2 %v1199_v3  ;;  %1408 = vmatpush.msrb.mxu3 %v1215_v6  ;;  %v1265_v6 = vld [vmem:[#allocation10 + $0x428] sm:$0xff] }
 0x397   :  { %v906_v61 = vadd.f32 %v905_v56, %v705_v51  ;;  %v926_v62 = vadd.f32 %v925_v57, %v725_v52  ;;  %v1285_v51 = vld [vmem:[#allocation10 + $0x4c8] sm:$0xff]  ;;  %v1239_v52 = vld [vmem:[#allocation10 + $0x358] sm:$0xff]  ;;  %v1284_v56 = vld [vmem:[#allocation10 + $0x4c0] sm:$0xff] }
 0x398   :  { %1389 = vmatpush.msrb.mxu2 %v1198_v9  ;;  %1409 = vmatpush.msrb.mxu3 %v1214_v10  ;;  %v1238_v57 = vld [vmem:[#allocation10 + $0x350] sm:$0xff]  ;;  %v1097_v9 = vperm.slane %v2041_v48, 5  ;;  %v1235_v10 = vld [vmem:[#allocation10 + $0x338] sm:$0xff] }
 0x399   :  { %v1112_v63 = vadd.f32 %v1092_v53, %v906_v61  ;;  %v1113_v0 = vadd.f32 %v1093_v54, %v926_v62  ;;  %v1255_v53 = vld [vmem:[#allocation10 + $0x3d8] sm:$0xff]  ;;  %v1268_v54 = vld [vmem:[#allocation10 + $0x440] sm:$0xff]  ;;  %1420 = vmatpush.msrb.mxu0 %v1239_v52  ;;  %v1237_v62 = vld [vmem:[#allocation10 + $0x348] sm:$0xff] }
 0x39a   :  { %1390 = vmatpush.msrb.mxu2 %v1197_v13  ;;  %1410 = vmatpush.msrb.mxu3 %v1213_v14  ;;  %v1283_v61 = vld [vmem:[#allocation10 + $0x4b8] sm:$0xff]  ;;  %v1264_v14 = vld [vmem:[#allocation10 + $0x420] sm:$0xff]  ;;  %v1245_v52 = vld [vmem:[#allocation10 + $0x388] sm:$0xff] }
 0x39b   :  { %v1122_v4 = vmax.f32 %v1112_v63, 0.0  ;;  %v1123_v5 = vmax.f32 %v1113_v0, 0.0  ;;  %1440 = vmatpush.msrb.mxu1 %v1255_v53  ;;  %v1253_v63 = vld [vmem:[#allocation10 + $0x3c8] sm:$0xff]  ;;  %1421 = vmatpush.msrb.mxu0 %v1238_v57  ;;  %v1266_v0 = vld [vmem:[#allocation10 + $0x430] sm:$0xff]  ;;  %v2045_v2 = vpop.f32.mrf.mxu2  ;;  %v2047_v3 = vpop.f32.mrf.mxu3  ;;  %v1228_v53 = vld [vmem:[#allocation10 + $0x300] sm:$0xff] }
 0x39c   :  { %1391 = vmatpush.msrb.mxu2 %v1196_v18  ;;  %1411 = vmatpush.msrb.mxu3 %v1212_v15  ;;  %v1234_v15 = vld [vmem:[#allocation10 + $0x330] sm:$0xff] }
 0x39d   :  { %1312 = vmatmul.f32.vlgmr.msra.gmra.mxu2 %v1122_v4  ;;  %1332 = vmatmul.f32.vlgmr.msra.gmra.mxu3 %v1123_v5  ;;  %v1236_v4 = vld [vmem:[#allocation10 + $0x340] sm:$0xff] }
 0x39e   :  { %1456 = vmatpush.msra.mxu2 %v1275_v22  ;;  %1476 = vmatpush.msra.mxu3 %v1291_v23  ;;  %v1252_v5 = vld [vmem:[#allocation10 + $0x3c0] sm:$0xff]  ;;  %v1250_v22 = vld [vmem:[#allocation10 + $0x3b0] sm:$0xff]  ;;  %v1263_v23 = vld [vmem:[#allocation10 + $0x418] sm:$0xff] }
 0x39f   :  { %1441 = vmatpush.msrb.mxu1 %v1254_v59  ;;  %1422 = vmatpush.msrb.mxu0 %v1237_v62 }
 0x3a0   :  { %1457 = vmatpush.msra.mxu2 %v1274_v26  ;;  %1477 = vmatpush.msra.mxu3 %v1290_v27  ;;  %v1233_v27 = vld [vmem:[#allocation10 + $0x328] sm:$0xff] }
 0x3a1   :  { %1442 = vmatpush.msrb.mxu1 %v1253_v63  ;;  %1423 = vmatpush.msrb.mxu0 %v1236_v4  ;;  %v1098_v4 = vperm.slane %v2041_v48, 6 }
 0x3a2   :  { %1458 = vmatpush.msra.mxu2 %v1273_v30  ;;  %1478 = vmatpush.msra.mxu3 %v1289_v31  ;;  %v1095_v30 = vperm.slane %v2041_v48, 3 }
 0x3a3   :  { %1443 = vmatpush.msrb.mxu1 %v1252_v5  ;;  %1424 = vmatpush.msrb.mxu0 %v1235_v10  ;;  %v1099_v5 = vperm.slane %v2041_v48, 7  ;;  %v1512_v48 = vld [vmem:[%s2133_s15 + $0x78] sm:$0xff] }
 0x3a4   :  { %1459 = vmatpush.msra.mxu2 %v1272_v36  ;;  %1479 = vmatpush.msra.mxu3 %v1288_v19  ;;  %v1278_v36 = vld [vmem:[#allocation10 + $0x490] sm:$0xff] }
 0x3a5   :  { %1444 = vmatpush.msrb.mxu1 %v1251_v11  ;;  %1425 = vmatpush.msrb.mxu0 %v1234_v15  ;;  %v1505_v15 = vld [vmem:[%s2133_s15 + $0x40] sm:$0xff] }
 0x3a6   :  { %1460 = vmatpush.msra.mxu2 %v1271_v41  ;;  %1480 = vmatpush.msra.mxu3 %v1287_v58  ;;  %v1248_v41 = vld [vmem:[#allocation10 + $0x3a0] sm:$0xff]  ;;  %v1261_v58 = vld [vmem:[#allocation10 + $0x408] sm:$0xff] }
 0x3a7   :  { %1445 = vmatpush.msrb.mxu1 %v1250_v22  ;;  %1426 = vmatpush.msrb.mxu0 %v1233_v27  ;;  %v1504_v22 = vld [vmem:[%s2133_s15 + $0x38] sm:$0xff]  ;;  %v1499_v27 = vld [vmem:[%s2133_s15 + $0x10] sm:$0xff] }
 0x3a8   :  { %1461 = vmatpush.msra.mxu2 %v1270_v45  ;;  %1481 = vmatpush.msra.mxu3 %v1286_v46  ;;  %v1231_v46 = vld [vmem:[#allocation10 + $0x318] sm:$0xff] }
 0x3a9   :  { %1446 = vmatpush.msrb.mxu1 %v1249_v28  ;;  %1427 = vmatpush.msrb.mxu0 %v1232_v40  ;;  %v1498_v28 = vld [vmem:[%s2133_s15 + $0x8] sm:$0xff] }
 0x3aa   :  { %1462 = vmatpush.msra.mxu2 %v1269_v39  ;;  %1482 = vmatpush.msra.mxu3 %v1285_v51  ;;  %v1246_v39 = vld [vmem:[#allocation10 + $0x390] sm:$0xff]  ;;  %v1229_v51 = vld [vmem:[#allocation10 + $0x308] sm:$0xff] }
 0x3ab   :  { %1447 = vmatpush.msrb.mxu1 %v1248_v41  ;;  %1428 = vmatpush.msrb.mxu0 %v1231_v46 }
 0x3ac   :  { %1463 = vmatpush.msra.mxu2 %v1268_v54  ;;  %1483 = vmatpush.msra.mxu3 %v1284_v56  ;;  %v1244_v54 = vld [vmem:[#allocation10 + $0x380] sm:$0xff]  ;;  %v1089_v56 = vld [vmem:[%s2130_s12 + $0x8] sm:$0x3] }
 0x3ad   :  { %1429 = vmatpush.msrb.mxu0 %v1230_v50  ;;  %v1100_v57 = vperm.slane %v1089_v56, 0  ;;  %v1101_v59 = vperm.slane %v1089_v56, 1 }
 0x3ae   :  { %1464 = vmatpush.msra.mxu2 %v1267_v60  ;;  %1484 = vmatpush.msra.mxu3 %v1283_v61 }
 0x3af   :  { %1430 = vmatpush.msrb.mxu0 %v1229_v51 }
 0x3b0   :  { %1465 = vmatpush.msra.mxu2 %v1266_v0  ;;  %1485 = vmatpush.msra.mxu3 %v1282_v1 }
 0x3b1   :  { %1431 = vmatpush.msrb.mxu0 %v1228_v53 }
 0x3b2   :  { %1466 = vmatpush.msra.mxu2 %v1265_v6  ;;  %1486 = vmatpush.msra.mxu3 %v1281_v7 }
 0x3b4   :  { %1467 = vmatpush.msra.mxu2 %v1264_v14  ;;  %1487 = vmatpush.msra.mxu3 %v1280_v16  ;;  %v1511_v14 = vld [vmem:[%s2133_s15 + $0x70] sm:$0xff]  ;;  %v1508_v16 = vld [vmem:[%s2133_s15 + $0x58] sm:$0xff] }
 0x3b6   :  { %1468 = vmatpush.msra.mxu2 %v1263_v23  ;;  %1488 = vmatpush.msra.mxu3 %v1279_v24  ;;  %v1503_v23 = vld [vmem:[%s2133_s15 + $0x30] sm:$0xff]  ;;  %v1502_v24 = vld [vmem:[%s2133_s15 + $0x28] sm:$0xff] }
 0x3b8   :  { %v985_v12 = vpop.f32.mrf.mxu0  ;;  %v1005_v13 = vpop.f32.mrf.mxu1  ;;  %1469 = vmatpush.msra.mxu2 %v1262_v35  ;;  %1489 = vmatpush.msra.mxu3 %v1278_v36 }
 0x3b9   :  { %v986_v17 = vadd.f32 %v985_v12, %v785_v47  ;;  %v1006_v18 = vadd.f32 %v1005_v13, %v805_v37  ;;  %v1247_v47 = vld [vmem:[#allocation10 + $0x398] sm:$0xff] }
 0x3ba   :  { %1470 = vmatpush.msra.mxu2 %v1261_v58  ;;  %1490 = vmatpush.msra.mxu3 %v1277_v44 }
 0x3bb   :  { %v1116_v25 = vadd.f32 %v1096_v8, %v986_v17  ;;  %v1117_v26 = vadd.f32 %v1097_v9, %v1006_v18  ;;  %1448 = vmatpush.msrb.mxu1 %v1247_v47  ;;  %v1507_v17 = vld [vmem:[%s2133_s15 + $0x50] sm:$0xff]  ;;  %v1506_v18 = vld [vmem:[%s2133_s15 + $0x48] sm:$0xff] }
 0x3bc   :  { %1491 = vmatpush.msra.mxu3 %v1276_v49 }
 0x3bd   :  { %v1126_v31 = vmax.f32 %v1116_v25, 0.0  ;;  %v1127_v32 = vmax.f32 %v1117_v26, 0.0  ;;  %v945_v33 = vpop.f32.mrf.mxu2  ;;  %v965_v34 = vpop.f32.mrf.mxu3  ;;  %1449 = vmatpush.msrb.mxu1 %v1246_v39  ;;  %v1501_v25 = vld [vmem:[%s2133_s15 + $0x20] sm:$0xff]  ;;  %v1500_v26 = vld [vmem:[%s2133_s15 + $0x18] sm:$0xff] }
 0x3be   :  { %v946_v19 = vadd.f32 %v945_v33, %v2030_v20  ;;  %v966_v38 = vadd.f32 %v965_v34, %v2032_v21  ;;  %v1260_v21 = vld [vmem:[#allocation10 + $0x400] sm:$0xff]  ;;  %v1563_v39 = vld [vmem:[#allocation2] ss:$0 sm:$0xff] }
 0x3bf   :  { %1392 = vmatmul.f32.vlgmr.msrb.gmra.mxu2 %v1126_v31  ;;  %1412 = vmatmul.f32.vlgmr.msrb.gmra.mxu3 %v1127_v32 }
 0x3c0   :  { %v1114_v55 = vadd.f32 %v1094_v29, %v946_v19  ;;  %v1115_v45 = vadd.f32 %v1095_v30, %v966_v38  ;;  %1471 = vmatpush.msra.mxu2 %v1260_v21  ;;  %1450 = vmatpush.msrb.mxu1 %v1245_v52  ;;  %v1562_v29 = vld [vmem:[%s2132_s14] ss:$0 sm:$0xff] }
 0x3c1   :  { %v1497_v30 = vld [vmem:[%s2133_s15] sm:$0xff] }
 0x3c2   :  { %v1124_v37 = vmax.f32 %v1114_v55, 0.0  ;;  %v1125_v20 = vmax.f32 %v1115_v45, 0.0  ;;  %1451 = vmatpush.msrb.mxu1 %v1244_v54 }
 0x3c4   :  { %1352 = vmatmul.f32.vlgmr.msra.gmra.mxu0 %v1124_v37  ;;  %1372 = vmatmul.f32.vlgmr.msra.gmra.mxu1 %v1125_v20 }
 0x3c5   :  { %1517 = vmatpush.msra.mxu0 %v1512_v48 }
 0x3c7   :  { %1518 = vmatpush.msra.mxu0 %v1511_v14 }
 0x3da   :  { %v1065_v60 = vpop.f32.mrf.mxu0  ;;  %v1085_v61 = vpop.f32.mrf.mxu1 }
 0x3db   :  { %v1066_v62 = vadd.f32 %v1065_v60, %v2045_v2  ;;  %v1086_v63 = vadd.f32 %v1085_v61, %v2047_v3 }
 0x3dd   :  { %v1120_v0 = vadd.f32 %v1100_v57, %v1066_v62  ;;  %v1121_v1 = vadd.f32 %v1101_v59, %v1086_v63 }
 0x3df   :  { %v1130_v6 = vmax.f32 %v1120_v0, 0.0  ;;  %v1131_v7 = vmax.f32 %v1121_v1, 0.0  ;;  %v1025_v8 = vpop.f32.mrf.mxu2  ;;  %v1045_v9 = vpop.f32.mrf.mxu3 }
 0x3e0   :  { %v1026_v10 = vadd.f32 %v1025_v8, %v2034_v42  ;;  %v1046_v11 = vadd.f32 %v1045_v9, %v2036_v43  ;;  %v1510_v42 = vld [vmem:[%s2133_s15 + $0x68] sm:$0xff]  ;;  %v1509_v43 = vld [vmem:[%s2133_s15 + $0x60] sm:$0xff] }
 0x3e1   :  { %1472 = vmatmul.f32.vlgmr.msra.gmra.mxu2 %v1130_v6  ;;  %1492 = vmatmul.f32.vlgmr.msra.gmra.mxu3 %v1131_v7 }
 0x3e2   :  { %v1118_v12 = vadd.f32 %v1098_v4, %v1026_v10  ;;  %v1119_v2 = vadd.f32 %v1099_v5, %v1046_v11  ;;  %1519 = vmatpush.msra.mxu0 %v1510_v42 }
 0x3e4   :  { %v1128_v13 = vmax.f32 %v1118_v12, 0.0  ;;  %v1129_v3 = vmax.f32 %v1119_v2, 0.0  ;;  %1520 = vmatpush.msra.mxu0 %v1509_v43 }
 0x3e6   :  { %1432 = vmatmul.f32.vlgmr.msrb.gmra.mxu0 %v1128_v13  ;;  %1452 = vmatmul.f32.vlgmr.msrb.gmra.mxu1 %v1129_v3 }
 0x3e7   :  { %1521 = vmatpush.msra.mxu0 %v1508_v16 }
 0x3e9   :  { %1522 = vmatpush.msra.mxu0 %v1507_v17 }
 0x3eb   :  { %1523 = vmatpush.msra.mxu0 %v1506_v18 }
 0x3ed   :  { %1524 = vmatpush.msra.mxu0 %v1505_v15 }
 0x3ef   :  { %1525 = vmatpush.msra.mxu0 %v1504_v22 }
 0x3f1   :  { %1526 = vmatpush.msra.mxu0 %v1503_v23 }
 0x3f3   :  { %1527 = vmatpush.msra.mxu0 %v1502_v24 }
 0x3f5   :  { %1528 = vmatpush.msra.mxu0 %v1501_v25 }
 0x3f7   :  { %1529 = vmatpush.msra.mxu0 %v1500_v26 }
 0x3f9   :  { %1530 = vmatpush.msra.mxu0 %v1499_v27 }
 0x3fb   :  { %1531 = vmatpush.msra.mxu0 %v1498_v28 }
 0x3fd   :  { %1532 = vmatpush.msra.mxu0 %v1497_v30 }
 0x420   :  { %v1313_v31 = vpop.f32.mrf.mxu2  ;;  %v1333_v33 = vpop.f32.mrf.mxu3 }
 0x421   :  { %v1314_v32 = vadd.f32 %v1562_v29, %v1313_v31 }
 0x423   :  { %v1334_v35 = vadd.f32 %v1333_v33, %v1314_v32 }
 0x441   :  { %v1353_v34 = vpop.f32.mrf.mxu0  ;;  %v1373_v19 = vpop.f32.mrf.mxu1 }
 0x442   :  { %v1354_v36 = vadd.f32 %v1353_v34, %v1334_v35  ;;  %v1393_v40 = vpop.f32.mrf.mxu2  ;;  %v1413_v58 = vpop.f32.mrf.mxu3 }
 0x444   :  { %v1374_v38 = vadd.f32 %v1373_v19, %v1354_v36 }
 0x446   :  { %v1394_v41 = vadd.f32 %v1393_v40, %v1374_v38 }
 0x448   :  { %v1414_v44 = vadd.f32 %v1413_v58, %v1394_v41 }
 0x463   :  { %v1433_v55 = vpop.f32.mrf.mxu0  ;;  %v1453_v46 = vpop.f32.mrf.mxu1 }
 0x464   :  { %v1434_v45 = vadd.f32 %v1433_v55, %v1414_v44  ;;  %v1473_v37 = vpop.f32.mrf.mxu2  ;;  %v1493_v21 = vpop.f32.mrf.mxu3 }
 0x466   :  { %v1454_v47 = vadd.f32 %v1453_v46, %v1434_v45 }
 0x468   :  { %v1474_v20 = vadd.f32 %v1473_v37, %v1454_v47 }
 0x46a   :  { %v1494_v49 = vadd.f32 %v1493_v21, %v1474_v20 }
 0x46c   :  { %v1496_v50 = vmax.f32 %v1494_v49, 0.0 }
 0x46e   :  { %1533 = vmatmul.f32.vlgmr.msra.gmra.mxu0 %v1496_v50 }
 0x4eb   :  { %v1534_v51 = vpop.f32.mrf.mxu0 }
 0x4ec   :  { %v1535_v52 = vadd.f32 %v1563_v39, %v1534_v51 }
 0x4ee   :  { %1538 = vst.msk [vmem:[%s2135_s17] sm:$0xff] %vm1537_vm5, %v1535_v52 }
 0x4ef   :  { %1543 = vsyncpa [#allocation4], 1 }
 0x4f0   :  { %1544 = vsyncpa [#allocation6], 1 }
 0x4f1   :  { %1545 = vsyncpa [#allocation9], 1 }

</bundles_post_ra>
